<compile_context>
chip_gen: v7x
topology: tpu7x:2x2x1
jax: 0.10.0
libtpu: 0.0.40
codegen_flags: <defaults>
</compile_context>

<pallas_src>
from functools import partial

import jax
import jax.numpy as jnp
from jax import lax
from jax.experimental import pallas as pl
from jax.experimental.pallas import tpu as pltpu

HEAD_SIZE = 64      # hard-coded in RUN_CUDA_RWKV7g_Torch (view(B, T, HC//64, 64))
WKV_CHUNK = 16      # time-chunk length for the blockwise WKV recurrence


def _round_up(x, m):
    return (x + m - 1) // m * m


# --------------------------------------------------------------------------
# Pallas kernel: tiled matmul (every nn.Linear), bf16 operands, f32 accum.
# --------------------------------------------------------------------------
def _matmul_kernel(x_ref, w_ref, o_ref, acc_ref):
    @pl.when(pl.program_id(2) == 0)
    def _():
        acc_ref[...] = jnp.zeros_like(acc_ref)

    acc_ref[...] += jnp.dot(x_ref[...], w_ref[...],
                            preferred_element_type=jnp.float32)

    @pl.when(pl.program_id(2) == pl.num_programs(2) - 1)
    def _():
        o_ref[...] = acc_ref[...].astype(o_ref.dtype)


def pallas_matmul(x2d, w, tm=256, tn=256, tk=512):
    """y = x2d @ w, tiled with K-axis accumulation.  Tile sizes are chosen to
    stay well inside v7x's 64 MiB VMEM; they can be raised on v6e/v5e."""
    M, K = x2d.shape
    K2, N = w.shape
    assert K == K2
    tm = min(tm, _round_up(M, 8))
    tk = min(tk, _round_up(K, 128))
    tn = min(tn, _round_up(N, 128))
    Mp, Kp, Np = _round_up(M, tm), _round_up(K, tk), _round_up(N, tn)
    xp = jnp.pad(x2d, ((0, Mp - M), (0, Kp - K))) if (Mp, Kp) != (M, K) else x2d
    wp = jnp.pad(w, ((0, Kp - K), (0, Np - N))) if (Kp, Np) != (K, N) else w
    xp = xp.astype(jnp.bfloat16)
    wp = wp.astype(jnp.bfloat16)

    out = pl.pallas_call(
        _matmul_kernel,
        grid=(Mp // tm, Np // tn, Kp // tk),
        in_specs=[pl.BlockSpec((tm, tk), lambda i, j, k: (i, k)),
                  pl.BlockSpec((tk, tn), lambda i, j, k: (k, j))],
        out_specs=pl.BlockSpec((tm, tn), lambda i, j, k: (i, j)),
        out_shape=jax.ShapeDtypeStruct((Mp, Np), jnp.float32),
        scratch_shapes=[pltpu.VMEM((tm, tn), jnp.float32)],
        compiler_params=pltpu.CompilerParams(
            dimension_semantics=("parallel", "parallel", "arbitrary")),
    )(xp, wp)
    if (Mp, Np) != (M, N):
        out = out[:M, :N]
    return out


def linear(x, w):
    """x: (B,T,K) @ w: (K,N) -> (B,T,N), f32 output.

    Tiny LoRA projections (K or N < 128) under-fill the MXU and the 128-lane
    vregs and are dominated by pallas_call overhead, so they are left to XLA
    (still bf16 operands, f32 accumulation)."""
    b, t, k = x.shape
    n = w.shape[1]
    if k < 128 or n < 128:
        return jnp.dot(x.astype(jnp.bfloat16), w.astype(jnp.bfloat16),
                       preferred_element_type=jnp.float32)
    return pallas_matmul(x.reshape(b * t, k), w).reshape(b, t, n)


# --------------------------------------------------------------------------
# Pallas kernel: fused LayerNorm / GroupNorm (stats + affine in one pass),
# gridded over row blocks so it scales with B*T; rows stay lane-dense at C.
# --------------------------------------------------------------------------
def _norm_kernel(x_ref, g_ref, b_ref, o_ref, *, num_groups, eps):
    x = x_ref[...]
    C = x.shape[-1]
    n = C // num_groups
    pieces = []
    for g in range(num_groups):                     # trace-time loop over groups
        xg = x[:, g * n:(g + 1) * n]
        mean = jnp.mean(xg, axis=-1, keepdims=True)
        xc = xg - mean
        var = jnp.mean(xc * xc, axis=-1, keepdims=True)
        pieces.append(xc * lax.rsqrt(var + eps))
    xhat = pieces[0] if num_groups == 1 else jnp.concatenate(pieces, axis=-1)
    o_ref[...] = xhat * g_ref[...] + b_ref[...]


def _fused_norm(x2d, gamma, beta, num_groups, eps, block_rows=256):
    M, C = x2d.shape
    tr = min(block_rows, _round_up(M, 8))
    Mp = _round_up(M, tr)
    xp = jnp.pad(x2d, ((0, Mp - M), (0, 0))) if Mp != M else x2d
    g2 = gamma.reshape(1, C).astype(jnp.float32)
    b2 = beta.reshape(1, C).astype(jnp.float32)
    out = pl.pallas_call(
        partial(_norm_kernel, num_groups=num_groups, eps=eps),
        grid=(Mp // tr,),
        in_specs=[pl.BlockSpec((tr, C), lambda i: (i, 0)),
                  pl.BlockSpec((1, C), lambda i: (0, 0)),
                  pl.BlockSpec((1, C), lambda i: (0, 0))],
        out_specs=pl.BlockSpec((tr, C), lambda i: (i, 0)),
        out_shape=jax.ShapeDtypeStruct((Mp, C), jnp.float32),
        compiler_params=pltpu.CompilerParams(dimension_semantics=("parallel",)),
    )(xp, g2, b2)
    return out[:M] if Mp != M else out


def layer_norm(x, gamma, beta, eps=1e-5):
    b, t, c = x.shape
    return _fused_norm(x.reshape(b * t, c), gamma, beta, 1, eps).reshape(b, t, c)


def group_norm(x2d, gamma, beta, num_groups, eps):
    return _fused_norm(x2d, gamma, beta, num_groups, eps)


# --------------------------------------------------------------------------
# Pallas kernel: RWKV-7 recurrence (WindBacksteppingFunction_Torch.forward),
# chunked / blockwise form.
#
# Per (b, h), per time step t:
#   sa_i = z_i * sum_j S_ij
#   S_ij = S_ij * w_i + sa_i * a_j + k_i * v_j        (w = exp(-exp(w_raw)))
#   y_i  = sum_j S_ij * q_j
#
# The kernel carries S^T (j = sublanes, i = lanes) in VMEM scratch across a
# time-chunk grid axis.  Inside a chunk of L steps only the N-vector row-sum
# recurrence is sequential; the rest is expressed with within-chunk cumulative
# decays D (and 1/D, precomputed in XLA) as MXU matmuls:
#   Y      = D * ( Q @ S0^T  +  tril(Q A^T) @ (SA/D)  +  tril(Q V^T) @ (K/D) )
#   S_L^T  = ( S0^T + A^T @ (SA/D) + V^T @ (K/D) ) * D[L-1]
# --------------------------------------------------------------------------
def _wkv_chunk_kernel(q_ref, k_ref, v_ref, a_ref, z_ref, w_ref, d_ref, dinv_ref,
                      y_ref, st_ref, sa_ref):
    @pl.when(pl.program_id(1) == 0)
    def _():
        st_ref[...] = jnp.zeros_like(st_ref)

    L, _ = q_ref.shape
    q = q_ref[...]
    k = k_ref[...]
    v = v_ref[...]
    a = a_ref[...]
    z = z_ref[...]
    w = w_ref[...]           # per-step decay exp(-exp(w_raw)), indexed by i
    d = d_ref[...]           # within-chunk cumulative decay prod_{<=t} w
    dinv = dinv_ref[...]     # 1 / d
    st0 = st_ref[...]        # S_0^T, shape (N, N), [j, i]

    # ---- sequential part: sa_t = z_t * rowsum(S_{t-1}); cheap (1,N) VPU work.
    asum = jnp.sum(a, axis=1, keepdims=True)         # (L, 1): sum_j a_t[j]
    vsum = jnp.sum(v, axis=1, keepdims=True)         # (L, 1): sum_j v_t[j]
    r = jnp.sum(st0, axis=0, keepdims=True)          # (1, N): rowsums of S_0
    for t in range(L):                               # unrolled at trace time
        sa_t = z[t:t + 1, :] * r
        sa_ref[t:t + 1, :] = sa_t
        r = (w[t:t + 1, :] * r + sa_t * asum[t:t + 1, :]
             + k[t:t + 1, :] * vsum[t:t + 1, :])
    sa = sa_ref[...]

    # ---- blockwise (MXU) part.
    kp = k * dinv                                    # k_t[i] / d_t[i]
    sap = sa * dinv                                  # sa_t[i] / d_t[i]
    ga = lax.dot_general(q, a, (((1,), (1,)), ((), ())),
                         preferred_element_type=jnp.float32)   # [s,u] = q_s.a_u
    gv = lax.dot_general(q, v, (((1,), (1,)), ((), ())),
                         preferred_element_type=jnp.float32)   # [s,u] = q_s.v_u
    s_i = lax.broadcasted_iota(jnp.int32, (L, L), 0)
    u_i = lax.broadcasted_iota(jnp.int32, (L, L), 1)
    causal = (u_i <= s_i).astype(jnp.float32)
    ga = ga * causal
    gv = gv * causal

    y = jnp.dot(q, st0, preferred_element_type=jnp.float32)          # carry-in
    y = y + jnp.dot(ga, sap, preferred_element_type=jnp.float32)
    y = y + jnp.dot(gv, kp, preferred_element_type=jnp.float32)
    y_ref[...] = d * y

    # ---- carry the state to the next chunk.
    at_sap = lax.dot_general(a, sap, (((0,), (0,)), ((), ())),
                             preferred_element_type=jnp.float32)
    vt_kp = lax.dot_general(v, kp, (((0,), (0,)), ((), ())),
                            preferred_element_type=jnp.float32)
    st_ref[...] = (st0 + at_sap + vt_kp) * d[L - 1:L, :]


def rwkv7_wkv(q, w, k, v, z, a, chunk=WKV_CHUNK):
    """Equivalent of RUN_CUDA_RWKV7g_Torch(q, w, k, v, z, a) (forward only)."""
    B, T, HC = q.shape
    N = HEAD_SIZE
    H = HC // N
    Tp = _round_up(T, chunk)
    nc = Tp // chunk

    def heads(x):   # (B, T, HC) -> (B*H, Tp, N), zero-padded along T
        x = x.reshape(B, T, H, N).transpose(0, 2, 1, 3).reshape(B * H, T, N)
        if Tp != T:
            x = jnp.pad(x, ((0, 0), (0, Tp - T), (0, 0)))
        return x.astype(jnp.float32)

    qs, ks, vs, zs, as_ = heads(q), heads(k), heads(v), heads(z), heads(a)

    # Decay transform + within-chunk cumulative decays hoisted out of the
    # sequential loop (cheap XLA elementwise / cumsum).
    ew = jnp.exp(heads(w))                               # exp(w_raw)
    wd = jnp.exp(-ew)                                    # per-step decay
    cum = jnp.cumsum(ew.reshape(B * H, nc, chunk, N), axis=2)
    cum = cum.reshape(B * H, Tp, N)
    d = jnp.exp(-cum)
    dinv = jnp.exp(cum)

    spec = pl.BlockSpec((None, chunk, N), lambda bh, c: (bh, c, 0))
    y = pl.pallas_call(
        _wkv_chunk_kernel,
        grid=(B * H, nc),
        in_specs=[spec] * 8,
        out_specs=spec,
        out_shape=jax.ShapeDtypeStruct((B * H, Tp, N), jnp.float32),
        scratch_shapes=[pltpu.VMEM((N, N), jnp.float32),       # S^T carry
                        pltpu.VMEM((chunk, N), jnp.float32)],   # sa rows
        compiler_params=pltpu.CompilerParams(
            dimension_semantics=("parallel", "arbitrary")),
    )(qs, ks, vs, as_, zs, wd, d, dinv)
    # TODO(synk): pack 2 heads per grid step to make the 64-wide per-head tiles
    # fully lane-dense (128); left as a further optimization.

    y = y[:, :T, :]
    return y.reshape(B, H, T, N).transpose(0, 2, 1, 3).reshape(B, T, HC)


def rwkv7_wkv_reference(q, w, k, v, z, a):
    """Step-by-step pure-JAX reference (same math as the torch forward)."""
    B, T, HC = q.shape
    N = HEAD_SIZE
    H = HC // N

    def hsplit(x):
        return jnp.moveaxis(x.reshape(B, T, H, N).astype(jnp.float32), 1, 0)

    qh, wh, kh, vh, zh, ah = map(hsplit, (q, w, k, v, z, a))   # (T, B, H, N)
    wd = jnp.exp(-jnp.exp(wh))

    def step(S, xs):
        qt, wt, kt, vt, zt, at = xs
        sa = zt * jnp.sum(S, axis=-1)
        S = (S * wt[..., None] + sa[..., None] * at[..., None, :]
             + kt[..., None] * vt[..., None, :])
        y = jnp.sum(S * qt[..., None, :], axis=-1)
        return S, y

    S0 = jnp.zeros((B, H, N, N), jnp.float32)
    _, ys = lax.scan(step, S0, (qh, wd, kh, vh, zh, ah))
    return jnp.moveaxis(ys, 0, 1).reshape(B, T, HC)


# --------------------------------------------------------------------------
# Module forward passes (glue in JAX, hot paths in Pallas)
# --------------------------------------------------------------------------
def time_shift(x):
    # nn.ZeroPad2d((0, 0, 1, -1)) on (B, T, C): shift by one along T
    return jnp.pad(x, ((0, 0), (1, 0), (0, 0)))[:, :-1, :]


def tmix_forward(p, x, v_first, is_first_layer):
    B, T, C = x.shape
    H = p["n_head"]
    N = C // H

    xx = time_shift(x) - x
    # all six addcmul token-shift blends in one fused XLA elementwise pass
    mixes = jnp.stack([p["x_r"], p["x_w"], p["x_k"],
                       p["x_v"], p["x_a"], p["x_g"]])            # (6,1,1,C)
    xs = x[None] + xx[None] * mixes                               # (6,B,T,C)
    xr, xw, xk, xv, xa, xg = (xs[i] for i in range(6))

    r = linear(xr, p["W_r"])
    w = -jax.nn.softplus(
        -(p["w0"] + linear(jnp.tanh(linear(xw, p["w1"])), p["w2"]))) - 0.5
    k = linear(xk, p["W_k"])
    v = linear(xv, p["W_v"])
    if is_first_layer:
        v_first = v
    else:
        mix = jax.nn.sigmoid(p["v0"] + linear(linear(xv, p["v1"]), p["v2"]))
        v = v + (v_first - v) * mix            # torch.lerp(v, v_first, mix)
    a = jax.nn.sigmoid(p["a0"] + linear(linear(xa, p["a1"]), p["a2"]))
    g = linear(jax.nn.sigmoid(linear(xg, p["g1"])), p["g2"])

    kk = k * p["k_k"]
    kk4 = kk.reshape(B, T, H, N)
    nrm = jnp.sqrt(jnp.sum(kk4 * kk4, axis=-1, keepdims=True))
    kk = (kk4 / jnp.maximum(nrm, 1e-12)).reshape(B, T, C)         # F.normalize
    k = k * (1.0 + (a - 1.0) * p["k_a"])

    y = rwkv7_wkv(r, w, k, v, -kk, kk * a)
    y = group_norm(y.reshape(B * T, C), p["ln_x_g"], p["ln_x_b"],
                   H, 0.00064).reshape(B, T, C)
    rk = jnp.sum(r.reshape(B, T, H, N) * k.reshape(B, T, H, N) * p["r_k"],
                 axis=-1, keepdims=True)
    y = y + (rk * v.reshape(B, T, H, N)).reshape(B, T, C)
    out = linear(y * g, p["W_o"])
    return out, v_first


def cmix_forward(p, x):
    xx = time_shift(x) - x
    k = x + xx * p["x_k"]
    k = jnp.square(jax.nn.relu(linear(k, p["W_key"])))
    return linear(k, p["W_value"])


def block_forward(p, x, v_first):
    if p["is_first"]:
        x = layer_norm(x, p["ln0_g"], p["ln0_b"])
    x_attn, v_first = tmix_forward(
        p["att"], layer_norm(x, p["ln1_g"], p["ln1_b"]), v_first, p["is_first"])
    x = x + x_attn
    x = x + cmix_forward(p["ffn"], layer_norm(x, p["ln2_g"], p["ln2_b"]))
    return x, v_first


def block_group_forward(layers, x, v_first, output_x=False, output_v_first=False):
    # NOTE: faithfully reproduces the reference BlockGroup.forward — the loop
    # never reassigns (x, v_first), so every inner layer gets the SAME inputs.
    layer_x_states, layer_v_states = [], []
    x_states = v_first_states = None
    for p in layers:
        x_states, v_first_states = block_forward(p, x, v_first)
        if output_x:
            layer_x_states.append(x_states)
        if output_v_first:
            layer_v_states.append(v_first_states)
    if output_x:
        return x_states, v_first_states, layer_x_states
    if output_v_first:
        return x_states, v_first_states, layer_v_states
    return x_states, v_first_states


# --------------------------------------------------------------------------
# Deterministic parameter construction (shapes per the PyTorch __init__)
# --------------------------------------------------------------------------
def init_block_params(key, args, group_id, loops_per_group):
    C = args["n_embd"]
    H = args["dim_att"] // args["head_size"]
    N = args["head_size"]
    num_all = args["num_hidden_groups"] * args["inner_group_num"]
    layer_idx = group_id * loops_per_group
    is_first = (layer_idx == 0)
    r0to1 = layer_idx / max(num_all - 1, 1)
    r1to0 = 1.0 - layer_idx / num_all

    idx = jnp.arange(C, dtype=jnp.float32)
    ddd = (idx / C).reshape(1, 1, C)
    lin = idx / (C - 1) - 0.5
    zig = (idx % N - (N - 1) / 2.0) / ((N - 1) / 2.0)
    zig = zig * jnp.abs(zig)
    www = -6.0 + 6.0 * (idx / (C - 1)) ** (1.0 + r0to1 ** 0.3)

    d_lora = max(32, int(round(1.8 * C ** 0.5 / 32) * 32))
    d_mv = max(32, int(round(1.3 * C ** 0.5 / 32) * 32))
    d_gate = max(32, int(round(0.6 * C ** 0.8 / 32) * 32))

    ks = jax.random.split(key, 16)

    def rnd(k, shape, scale):
        # torch inits several of these to zero / orthogonal; small deterministic
        # random values are used so the whole compute path is exercised.
        return scale * jax.random.normal(k, shape, dtype=jnp.float32)

    att = dict(
        n_head=H,
        x_r=1.0 - ddd ** (0.2 * r1to0),
        x_w=1.0 - ddd ** (0.9 * r1to0),
        x_k=1.0 - ddd ** (0.7 * r1to0),
        x_v=1.0 - ddd ** (0.7 * r1to0),
        x_a=1.0 - ddd ** (0.9 * r1to0),
        x_g=1.0 - ddd ** (0.2 * r1to0),
        w0=(www + 0.5 + zig * 2.5).reshape(1, 1, C),
        w1=rnd(ks[0], (C, d_lora), 0.05),
        w2=rnd(ks[1], (d_lora, C), 0.05),
        a0=(-0.19 + zig * 0.3 + lin * 0.4).reshape(1, 1, C),
        a1=rnd(ks[2], (C, d_lora), 0.05),
        a2=rnd(ks[3], (d_lora, C), 0.05),
        v0=(0.73 - lin * 0.4).reshape(1, 1, C),
        v1=rnd(ks[4], (C, d_mv), 0.05),
        v2=rnd(ks[5], (d_mv, C), 0.05),
        g1=rnd(ks[6], (C, d_gate), 0.05),
        g2=rnd(ks[7], (d_gate, C), 0.05),
        k_k=(0.71 - lin * 0.1).reshape(1, 1, C),
        k_a=jnp.full((1, 1, C), 1.02, jnp.float32),
        r_k=jnp.full((H, N), -0.04, jnp.float32),
        W_r=rnd(ks[8], (C, C), 0.5 / C ** 0.5),
        W_k=rnd(ks[9], (C, C), 0.05 / C ** 0.5),
        W_v=rnd(ks[10], (C, C), 0.5 / C ** 0.5),
        W_o=rnd(ks[11], (C, C), 0.5 / C ** 0.5),
        ln_x_g=jnp.ones((C,), jnp.float32),
        ln_x_b=jnp.zeros((C,), jnp.float32),
    )
    ffn = dict(
        x_k=1.0 - ddd ** (r1to0 ** 4),
        W_key=rnd(ks[12], (C, 4 * C), 0.5 / C ** 0.5),
        W_value=rnd(ks[13], (4 * C, C), 0.5 / C ** 0.5),
    )
    return dict(
        is_first=is_first,
        ln0_g=jnp.ones((C,), jnp.float32), ln0_b=jnp.zeros((C,), jnp.float32),
        ln1_g=jnp.ones((C,), jnp.float32), ln1_b=jnp.zeros((C,), jnp.float32),
        ln2_g=jnp.ones((C,), jnp.float32), ln2_b=jnp.zeros((C,), jnp.float32),
        att=att, ffn=ffn,
    )


# TODO(synk): only the forward pass is implemented; torch.utils.checkpoint and
# the custom autograd backward of WindBacksteppingFunction_Torch are training-
# time concerns with no forward-pass effect.

if __name__ == "__main__":
    args = dict(n_embd=128, dim_att=128, head_size=64,
                inner_group_num=2, num_hidden_groups=2)
    group_id = 1          # layer 0 exercises the ln0 / v_first-set path,
                          # layer 1 exercises the v_first-lerp path
    B, T, C = 2, 32, args["n_embd"]

    key = jax.random.PRNGKey(0)
    k_x, k_v, k_p, k_wkv = jax.random.split(key, 4)

    # --- 1) check the chunked Pallas WKV kernel against a step-by-step ref ---
    kq = jax.random.split(k_wkv, 6)
    q_c = 0.2 * jax.random.normal(kq[0], (B, T, C), jnp.float32)
    k_c = 0.2 * jax.random.normal(kq[1], (B, T, C), jnp.float32)
    v_c = 0.2 * jax.random.normal(kq[2], (B, T, C), jnp.float32)
    z_c = 0.1 * jax.random.normal(kq[3], (B, T, C), jnp.float32)
    a_c = 0.1 * jax.random.normal(kq[4], (B, T, C), jnp.float32)
    w_c = -jax.nn.softplus(-jax.random.normal(kq[5], (B, T, C), jnp.float32)) - 0.5
    y_pl = jax.block_until_ready(rwkv7_wkv(q_c, w_c, k_c, v_c, z_c, a_c))
    y_rf = jax.block_until_ready(rwkv7_wkv_reference(q_c, w_c, k_c, v_c, z_c, a_c))
    scale = float(jnp.max(jnp.abs(y_rf))) + 1e-6
    err = float(jnp.max(jnp.abs(y_pl - y_rf)))
    assert err <= 1e-3 * scale + 1e-4, f"WKV kernel mismatch: {err} vs scale {scale}"

    # --- 2) full BlockGroup forward ---
    x = jax.random.normal(k_x, (B, T, C), dtype=jnp.float32)
    v_first = jax.random.normal(k_v, (B, T, C), dtype=jnp.float32)
    layer_keys = jax.random.split(k_p, args["inner_group_num"])
    layers = [init_block_params(layer_keys[i], args, group_id, i)
              for i in range(args["inner_group_num"])]

    x_out, v_out, layer_xs = block_group_forward(
        layers, x, v_first, output_x=True, output_v_first=False)

    jax.block_until_ready(x_out)
    jax.block_until_ready(v_out)
    for yl in layer_xs:
        jax.block_until_ready(yl)
    assert x_out.shape == (B, T, C) and v_out.shape == (B, T, C)
    print("KERNEL_OK")
</pallas_src>

<mosaic_0001>
module attributes {stable_mosaic.version = 11 : i64} {
  func.func @_wkv_chunk_kernel(%arg0: i32, %arg1: i32, %arg2: memref<1x16x64xf32, #tpu.memory_space<vmem>>, %arg3: memref<1x16x64xf32, #tpu.memory_space<vmem>>, %arg4: memref<1x16x64xf32, #tpu.memory_space<vmem>>, %arg5: memref<1x16x64xf32, #tpu.memory_space<vmem>>, %arg6: memref<1x16x64xf32, #tpu.memory_space<vmem>>, %arg7: memref<1x16x64xf32, #tpu.memory_space<vmem>>, %arg8: memref<1x16x64xf32, #tpu.memory_space<vmem>>, %arg9: memref<1x16x64xf32, #tpu.memory_space<vmem>>, %arg10: memref<1x16x64xf32, #tpu.memory_space<vmem>>, %arg11: memref<64x64xf32, #tpu.memory_space<vmem>>, %arg12: memref<16x64xf32, #tpu.memory_space<vmem>>) attributes {dimension_semantics = [#tpu.dimension_semantics<parallel>, #tpu.dimension_semantics<arbitrary>], iteration_bounds = array<i64: 4, 2>, scalar_prefetch = 0 : i64, scratch_operands = 2 : i64, tpu.core_type = #tpu.core_type<tc>, window_params = [{transform_indices = @transform_0, window_bounds = array<i64: 1, 16, 64>}, {transform_indices = @transform_1, window_bounds = array<i64: 1, 16, 64>}, {transform_indices = @transform_2, window_bounds = array<i64: 1, 16, 64>}, {transform_indices = @transform_3, window_bounds = array<i64: 1, 16, 64>}, {transform_indices = @transform_4, window_bounds = array<i64: 1, 16, 64>}, {transform_indices = @transform_5, window_bounds = array<i64: 1, 16, 64>}, {transform_indices = @transform_6, window_bounds = array<i64: 1, 16, 64>}, {transform_indices = @transform_7, window_bounds = array<i64: 1, 16, 64>}, {transform_indices = @transform_8, window_bounds = array<i64: 1, 16, 64>}]} {
    %c0_i32 = arith.constant 0 : i32
    %0 = arith.cmpi eq, %arg1, %c0_i32 : i32
    %1 = arith.extui %0 : i1 to i32
    %c0_i32_0 = arith.constant 0 : i32
    %2 = arith.cmpi ne, %1, %c0_i32_0 : i32
    scf.if %2 {
      %cst_59 = arith.constant 0.000000e+00 : f32
      %268 = vector.broadcast %cst_59 : f32 to vector<64x64xf32>
      %c0_60 = arith.constant 0 : index
      %c0_61 = arith.constant 0 : index
      %269 = vector.load %arg11[%c0_60, %c0_61] : memref<64x64xf32, #tpu.memory_space<vmem>>, vector<64x64xf32>
      tpu.vector_store %arg11[%c0_60, %c0_61], %268 {strides = array<i32>} : memref<64x64xf32, #tpu.memory_space<vmem>>, vector<64x64xf32>,
    } else {
    }
    %c0 = arith.constant 0 : index
    %c0_1 = arith.constant 0 : index
    %c0_2 = arith.constant 0 : index
    %3 = vector.load %arg2[%c0, %c0_1, %c0_2] : memref<1x16x64xf32, #tpu.memory_space<vmem>>, vector<1x16x64xf32>
    %4 = vector.shape_cast %3 : vector<1x16x64xf32> to vector<16x64xf32>
    %c0_3 = arith.constant 0 : index
    %c0_4 = arith.constant 0 : index
    %c0_5 = arith.constant 0 : index
    %5 = vector.load %arg3[%c0_3, %c0_4, %c0_5] : memref<1x16x64xf32, #tpu.memory_space<vmem>>, vector<1x16x64xf32>
    %6 = vector.shape_cast %5 : vector<1x16x64xf32> to vector<16x64xf32>
    %c0_6 = arith.constant 0 : index
    %c0_7 = arith.constant 0 : index
    %c0_8 = arith.constant 0 : index
    %7 = vector.load %arg4[%c0_6, %c0_7, %c0_8] : memref<1x16x64xf32, #tpu.memory_space<vmem>>, vector<1x16x64xf32>
    %8 = vector.shape_cast %7 : vector<1x16x64xf32> to vector<16x64xf32>
    %c0_9 = arith.constant 0 : index
    %c0_10 = arith.constant 0 : index
    %c0_11 = arith.constant 0 : index
    %9 = vector.load %arg5[%c0_9, %c0_10, %c0_11] : memref<1x16x64xf32, #tpu.memory_space<vmem>>, vector<1x16x64xf32>
    %10 = vector.shape_cast %9 : vector<1x16x64xf32> to vector<16x64xf32>
    %c0_12 = arith.constant 0 : index
    %c0_13 = arith.constant 0 : index
    %c0_14 = arith.constant 0 : index
    %11 = vector.load %arg6[%c0_12, %c0_13, %c0_14] : memref<1x16x64xf32, #tpu.memory_space<vmem>>, vector<1x16x64xf32>
    %12 = vector.shape_cast %11 : vector<1x16x64xf32> to vector<16x64xf32>
    %c0_15 = arith.constant 0 : index
    %c0_16 = arith.constant 0 : index
    %c0_17 = arith.constant 0 : index
    %13 = vector.load %arg7[%c0_15, %c0_16, %c0_17] : memref<1x16x64xf32, #tpu.memory_space<vmem>>, vector<1x16x64xf32>
    %14 = vector.shape_cast %13 : vector<1x16x64xf32> to vector<16x64xf32>
    %c0_18 = arith.constant 0 : index
    %c0_19 = arith.constant 0 : index
    %c0_20 = arith.constant 0 : index
    %15 = vector.load %arg8[%c0_18, %c0_19, %c0_20] : memref<1x16x64xf32, #tpu.memory_space<vmem>>, vector<1x16x64xf32>
    %16 = vector.shape_cast %15 : vector<1x16x64xf32> to vector<16x64xf32>
    %c0_21 = arith.constant 0 : index
    %c0_22 = arith.constant 0 : index
    %c0_23 = arith.constant 0 : index
    %17 = vector.load %arg9[%c0_21, %c0_22, %c0_23] : memref<1x16x64xf32, #tpu.memory_space<vmem>>, vector<1x16x64xf32>
    %18 = vector.shape_cast %17 : vector<1x16x64xf32> to vector<16x64xf32>
    %c0_24 = arith.constant 0 : index
    %c0_25 = arith.constant 0 : index
    %19 = vector.load %arg11[%c0_24, %c0_25] : memref<64x64xf32, #tpu.memory_space<vmem>>, vector<64x64xf32>
    %cst = arith.constant dense<0.000000e+00> : vector<16xf32>
    %20 = vector.multi_reduction <add>, %10, %cst [1] : vector<16x64xf32> to vector<16xf32>
    %21 = vector.shape_cast %20 : vector<16xf32> to vector<16x1xf32>
    %cst_26 = arith.constant dense<0.000000e+00> : vector<16xf32>
    %22 = vector.multi_reduction <add>, %8, %cst_26 [1] : vector<16x64xf32> to vector<16xf32>
    %23 = vector.shape_cast %22 : vector<16xf32> to vector<16x1xf32>
    %cst_27 = arith.constant dense<0.000000e+00> : vector<64xf32>
    %24 = vector.multi_reduction <add>, %19, %cst_27 [0] : vector<64x64xf32> to vector<64xf32>
    %25 = vector.shape_cast %24 : vector<64xf32> to vector<1x64xf32>
    %26 = vector.extract_strided_slice %12 {offsets = [0, 0], sizes = [1, 64], strides = [1, 1]} : vector<16x64xf32> to vector<1x64xf32>
    %27 = arith.mulf %26, %25 : vector<1x64xf32>
    %c0_28 = arith.constant 0 : index
    %c0_29 = arith.constant 0 : index
    %28 = vector.load %arg12[%c0_28, %c0_29] : memref<16x64xf32, #tpu.memory_space<vmem>>, vector<1x64xf32>
    tpu.vector_store %arg12[%c0_28, %c0_29], %27 {strides = array<i32>} : memref<16x64xf32, #tpu.memory_space<vmem>>, vector<1x64xf32>,
    %29 = vector.extract_strided_slice %14 {offsets = [0, 0], sizes = [1, 64], strides = [1, 1]} : vector<16x64xf32> to vector<1x64xf32>
    %30 = arith.mulf %29, %25 : vector<1x64xf32>
    %31 = vector.extract_strided_slice %21 {offsets = [0, 0], sizes = [1, 1], strides = [1, 1]} : vector<16x1xf32> to vector<1x1xf32>
    %32 = vector.broadcast %31 : vector<1x1xf32> to vector<1x64xf32>
    %33 = arith.mulf %27, %32 : vector<1x64xf32>
    %34 = arith.addf %30, %33 : vector<1x64xf32>
    %35 = vector.extract_strided_slice %6 {offsets = [0, 0], sizes = [1, 64], strides = [1, 1]} : vector<16x64xf32> to vector<1x64xf32>
    %36 = vector.extract_strided_slice %23 {offsets = [0, 0], sizes = [1, 1], strides = [1, 1]} : vector<16x1xf32> to vector<1x1xf32>
    %37 = vector.broadcast %36 : vector<1x1xf32> to vector<1x64xf32>
    %38 = arith.mulf %35, %37 : vector<1x64xf32>
    %39 = arith.addf %34, %38 : vector<1x64xf32>
    %40 = vector.extract_strided_slice %12 {offsets = [1, 0], sizes = [1, 64], strides = [1, 1]} : vector<16x64xf32> to vector<1x64xf32>
    %41 = arith.mulf %40, %39 : vector<1x64xf32>
    %c1 = arith.constant 1 : index
    %c0_30 = arith.constant 0 : index
    %42 = vector.load %arg12[%c1, %c0_30] : memref<16x64xf32, #tpu.memory_space<vmem>>, vector<1x64xf32>
    tpu.vector_store %arg12[%c1, %c0_30], %41 {strides = array<i32>} : memref<16x64xf32, #tpu.memory_space<vmem>>, vector<1x64xf32>,
    %43 = vector.extract_strided_slice %14 {offsets = [1, 0], sizes = [1, 64], strides = [1, 1]} : vector<16x64xf32> to vector<1x64xf32>
    %44 = arith.mulf %43, %39 : vector<1x64xf32>
    %45 = vector.extract_strided_slice %21 {offsets = [1, 0], sizes = [1, 1], strides = [1, 1]} : vector<16x1xf32> to vector<1x1xf32>
    %46 = vector.broadcast %45 : vector<1x1xf32> to vector<1x64xf32>
    %47 = arith.mulf %41, %46 : vector<1x64xf32>
    %48 = arith.addf %44, %47 : vector<1x64xf32>
    %49 = vector.extract_strided_slice %6 {offsets = [1, 0], sizes = [1, 64], strides = [1, 1]} : vector<16x64xf32> to vector<1x64xf32>
    %50 = vector.extract_strided_slice %23 {offsets = [1, 0], sizes = [1, 1], strides = [1, 1]} : vector<16x1xf32> to vector<1x1xf32>
    %51 = vector.broadcast %50 : vector<1x1xf32> to vector<1x64xf32>
    %52 = arith.mulf %49, %51 : vector<1x64xf32>
    %53 = arith.addf %48, %52 : vector<1x64xf32>
    %54 = vector.extract_strided_slice %12 {offsets = [2, 0], sizes = [1, 64], strides = [1, 1]} : vector<16x64xf32> to vector<1x64xf32>
    %55 = arith.mulf %54, %53 : vector<1x64xf32>
    %c2 = arith.constant 2 : index
    %c0_31 = arith.constant 0 : index
    %56 = vector.load %arg12[%c2, %c0_31] : memref<16x64xf32, #tpu.memory_space<vmem>>, vector<1x64xf32>
    tpu.vector_store %arg12[%c2, %c0_31], %55 {strides = array<i32>} : memref<16x64xf32, #tpu.memory_space<vmem>>, vector<1x64xf32>,
    %57 = vector.extract_strided_slice %14 {offsets = [2, 0], sizes = [1, 64], strides = [1, 1]} : vector<16x64xf32> to vector<1x64xf32>
    %58 = arith.mulf %57, %53 : vector<1x64xf32>
    %59 = vector.extract_strided_slice %21 {offsets = [2, 0], sizes = [1, 1], strides = [1, 1]} : vector<16x1xf32> to vector<1x1xf32>
    %60 = vector.broadcast %59 : vector<1x1xf32> to vector<1x64xf32>
    %61 = arith.mulf %55, %60 : vector<1x64xf32>
    %62 = arith.addf %58, %61 : vector<1x64xf32>
    %63 = vector.extract_strided_slice %6 {offsets = [2, 0], sizes = [1, 64], strides = [1, 1]} : vector<16x64xf32> to vector<1x64xf32>
    %64 = vector.extract_strided_slice %23 {offsets = [2, 0], sizes = [1, 1], strides = [1, 1]} : vector<16x1xf32> to vector<1x1xf32>
    %65 = vector.broadcast %64 : vector<1x1xf32> to vector<1x64xf32>
    %66 = arith.mulf %63, %65 : vector<1x64xf32>
    %67 = arith.addf %62, %66 : vector<1x64xf32>
    %68 = vector.extract_strided_slice %12 {offsets = [3, 0], sizes = [1, 64], strides = [1, 1]} : vector<16x64xf32> to vector<1x64xf32>
    %69 = arith.mulf %68, %67 : vector<1x64xf32>
    %c3 = arith.constant 3 : index
    %c0_32 = arith.constant 0 : index
    %70 = vector.load %arg12[%c3, %c0_32] : memref<16x64xf32, #tpu.memory_space<vmem>>, vector<1x64xf32>
    tpu.vector_store %arg12[%c3, %c0_32], %69 {strides = array<i32>} : memref<16x64xf32, #tpu.memory_space<vmem>>, vector<1x64xf32>,
    %71 = vector.extract_strided_slice %14 {offsets = [3, 0], sizes = [1, 64], strides = [1, 1]} : vector<16x64xf32> to vector<1x64xf32>
    %72 = arith.mulf %71, %67 : vector<1x64xf32>
    %73 = vector.extract_strided_slice %21 {offsets = [3, 0], sizes = [1, 1], strides = [1, 1]} : vector<16x1xf32> to vector<1x1xf32>
    %74 = vector.broadcast %73 : vector<1x1xf32> to vector<1x64xf32>
    %75 = arith.mulf %69, %74 : vector<1x64xf32>
    %76 = arith.addf %72, %75 : vector<1x64xf32>
    %77 = vector.extract_strided_slice %6 {offsets = [3, 0], sizes = [1, 64], strides = [1, 1]} : vector<16x64xf32> to vector<1x64xf32>
    %78 = vector.extract_strided_slice %23 {offsets = [3, 0], sizes = [1, 1], strides = [1, 1]} : vector<16x1xf32> to vector<1x1xf32>
    %79 = vector.broadcast %78 : vector<1x1xf32> to vector<1x64xf32>
    %80 = arith.mulf %77, %79 : vector<1x64xf32>
    %81 = arith.addf %76, %80 : vector<1x64xf32>
    %82 = vector.extract_strided_slice %12 {offsets = [4, 0], sizes = [1, 64], strides = [1, 1]} : vector<16x64xf32> to vector<1x64xf32>
    %83 = arith.mulf %82, %81 : vector<1x64xf32>
    %c4 = arith.constant 4 : index
    %c0_33 = arith.constant 0 : index
    %84 = vector.load %arg12[%c4, %c0_33] : memref<16x64xf32, #tpu.memory_space<vmem>>, vector<1x64xf32>
    tpu.vector_store %arg12[%c4, %c0_33], %83 {strides = array<i32>} : memref<16x64xf32, #tpu.memory_space<vmem>>, vector<1x64xf32>,
    %85 = vector.extract_strided_slice %14 {offsets = [4, 0], sizes = [1, 64], strides = [1, 1]} : vector<16x64xf32> to vector<1x64xf32>
    %86 = arith.mulf %85, %81 : vector<1x64xf32>
    %87 = vector.extract_strided_slice %21 {offsets = [4, 0], sizes = [1, 1], strides = [1, 1]} : vector<16x1xf32> to vector<1x1xf32>
    %88 = vector.broadcast %87 : vector<1x1xf32> to vector<1x64xf32>
    %89 = arith.mulf %83, %88 : vector<1x64xf32>
    %90 = arith.addf %86, %89 : vector<1x64xf32>
    %91 = vector.extract_strided_slice %6 {offsets = [4, 0], sizes = [1, 64], strides = [1, 1]} : vector<16x64xf32> to vector<1x64xf32>
    %92 = vector.extract_strided_slice %23 {offsets = [4, 0], sizes = [1, 1], strides = [1, 1]} : vector<16x1xf32> to vector<1x1xf32>
    %93 = vector.broadcast %92 : vector<1x1xf32> to vector<1x64xf32>
    %94 = arith.mulf %91, %93 : vector<1x64xf32>
    %95 = arith.addf %90, %94 : vector<1x64xf32>
    %96 = vector.extract_strided_slice %12 {offsets = [5, 0], sizes = [1, 64], strides = [1, 1]} : vector<16x64xf32> to vector<1x64xf32>
    %97 = arith.mulf %96, %95 : vector<1x64xf32>
    %c5 = arith.constant 5 : index
    %c0_34 = arith.constant 0 : index
    %98 = vector.load %arg12[%c5, %c0_34] : memref<16x64xf32, #tpu.memory_space<vmem>>, vector<1x64xf32>
    tpu.vector_store %arg12[%c5, %c0_34], %97 {strides = array<i32>} : memref<16x64xf32, #tpu.memory_space<vmem>>, vector<1x64xf32>,
    %99 = vector.extract_strided_slice %14 {offsets = [5, 0], sizes = [1, 64], strides = [1, 1]} : vector<16x64xf32> to vector<1x64xf32>
    %100 = arith.mulf %99, %95 : vector<1x64xf32>
    %101 = vector.extract_strided_slice %21 {offsets = [5, 0], sizes = [1, 1], strides = [1, 1]} : vector<16x1xf32> to vector<1x1xf32>
    %102 = vector.broadcast %101 : vector<1x1xf32> to vector<1x64xf32>
    %103 = arith.mulf %97, %102 : vector<1x64xf32>
    %104 = arith.addf %100, %103 : vector<1x64xf32>
    %105 = vector.extract_strided_slice %6 {offsets = [5, 0], sizes = [1, 64], strides = [1, 1]} : vector<16x64xf32> to vector<1x64xf32>
    %106 = vector.extract_strided_slice %23 {offsets = [5, 0], sizes = [1, 1], strides = [1, 1]} : vector<16x1xf32> to vector<1x1xf32>
    %107 = vector.broadcast %106 : vector<1x1xf32> to vector<1x64xf32>
    %108 = arith.mulf %105, %107 : vector<1x64xf32>
    %109 = arith.addf %104, %108 : vector<1x64xf32>
    %110 = vector.extract_strided_slice %12 {offsets = [6, 0], sizes = [1, 64], strides = [1, 1]} : vector<16x64xf32> to vector<1x64xf32>
    %111 = arith.mulf %110, %109 : vector<1x64xf32>
    %c6 = arith.constant 6 : index
    %c0_35 = arith.constant 0 : index
    %112 = vector.load %arg12[%c6, %c0_35] : memref<16x64xf32, #tpu.memory_space<vmem>>, vector<1x64xf32>
    tpu.vector_store %arg12[%c6, %c0_35], %111 {strides = array<i32>} : memref<16x64xf32, #tpu.memory_space<vmem>>, vector<1x64xf32>,
    %113 = vector.extract_strided_slice %14 {offsets = [6, 0], sizes = [1, 64], strides = [1, 1]} : vector<16x64xf32> to vector<1x64xf32>
    %114 = arith.mulf %113, %109 : vector<1x64xf32>
    %115 = vector.extract_strided_slice %21 {offsets = [6, 0], sizes = [1, 1], strides = [1, 1]} : vector<16x1xf32> to vector<1x1xf32>
    %116 = vector.broadcast %115 : vector<1x1xf32> to vector<1x64xf32>
    %117 = arith.mulf %111, %116 : vector<1x64xf32>
    %118 = arith.addf %114, %117 : vector<1x64xf32>
    %119 = vector.extract_strided_slice %6 {offsets = [6, 0], sizes = [1, 64], strides = [1, 1]} : vector<16x64xf32> to vector<1x64xf32>
    %120 = vector.extract_strided_slice %23 {offsets = [6, 0], sizes = [1, 1], strides = [1, 1]} : vector<16x1xf32> to vector<1x1xf32>
    %121 = vector.broadcast %120 : vector<1x1xf32> to vector<1x64xf32>
    %122 = arith.mulf %119, %121 : vector<1x64xf32>
    %123 = arith.addf %118, %122 : vector<1x64xf32>
    %124 = vector.extract_strided_slice %12 {offsets = [7, 0], sizes = [1, 64], strides = [1, 1]} : vector<16x64xf32> to vector<1x64xf32>
    %125 = arith.mulf %124, %123 : vector<1x64xf32>
    %c7 = arith.constant 7 : index
    %c0_36 = arith.constant 0 : index
    %126 = vector.load %arg12[%c7, %c0_36] : memref<16x64xf32, #tpu.memory_space<vmem>>, vector<1x64xf32>
    tpu.vector_store %arg12[%c7, %c0_36], %125 {strides = array<i32>} : memref<16x64xf32, #tpu.memory_space<vmem>>, vector<1x64xf32>,
    %127 = vector.extract_strided_slice %14 {offsets = [7, 0], sizes = [1, 64], strides = [1, 1]} : vector<16x64xf32> to vector<1x64xf32>
    %128 = arith.mulf %127, %123 : vector<1x64xf32>
    %129 = vector.extract_strided_slice %21 {offsets = [7, 0], sizes = [1, 1], strides = [1, 1]} : vector<16x1xf32> to vector<1x1xf32>
    %130 = vector.broadcast %129 : vector<1x1xf32> to vector<1x64xf32>
    %131 = arith.mulf %125, %130 : vector<1x64xf32>
    %132 = arith.addf %128, %131 : vector<1x64xf32>
    %133 = vector.extract_strided_slice %6 {offsets = [7, 0], sizes = [1, 64], strides = [1, 1]} : vector<16x64xf32> to vector<1x64xf32>
    %134 = vector.extract_strided_slice %23 {offsets = [7, 0], sizes = [1, 1], strides = [1, 1]} : vector<16x1xf32> to vector<1x1xf32>
    %135 = vector.broadcast %134 : vector<1x1xf32> to vector<1x64xf32>
    %136 = arith.mulf %133, %135 : vector<1x64xf32>
    %137 = arith.addf %132, %136 : vector<1x64xf32>
    %138 = vector.extract_strided_slice %12 {offsets = [8, 0], sizes = [1, 64], strides = [1, 1]} : vector<16x64xf32> to vector<1x64xf32>
    %139 = arith.mulf %138, %137 : vector<1x64xf32>
    %c8 = arith.constant 8 : index
    %c0_37 = arith.constant 0 : index
    %140 = vector.load %arg12[%c8, %c0_37] : memref<16x64xf32, #tpu.memory_space<vmem>>, vector<1x64xf32>
    tpu.vector_store %arg12[%c8, %c0_37], %139 {strides = array<i32>} : memref<16x64xf32, #tpu.memory_space<vmem>>, vector<1x64xf32>,
    %141 = vector.extract_strided_slice %14 {offsets = [8, 0], sizes = [1, 64], strides = [1, 1]} : vector<16x64xf32> to vector<1x64xf32>
    %142 = arith.mulf %141, %137 : vector<1x64xf32>
    %143 = vector.extract_strided_slice %21 {offsets = [8, 0], sizes = [1, 1], strides = [1, 1]} : vector<16x1xf32> to vector<1x1xf32>
    %144 = vector.broadcast %143 : vector<1x1xf32> to vector<1x64xf32>
    %145 = arith.mulf %139, %144 : vector<1x64xf32>
    %146 = arith.addf %142, %145 : vector<1x64xf32>
    %147 = vector.extract_strided_slice %6 {offsets = [8, 0], sizes = [1, 64], strides = [1, 1]} : vector<16x64xf32> to vector<1x64xf32>
    %148 = vector.extract_strided_slice %23 {offsets = [8, 0], sizes = [1, 1], strides = [1, 1]} : vector<16x1xf32> to vector<1x1xf32>
    %149 = vector.broadcast %148 : vector<1x1xf32> to vector<1x64xf32>
    %150 = arith.mulf %147, %149 : vector<1x64xf32>
    %151 = arith.addf %146, %150 : vector<1x64xf32>
    %152 = vector.extract_strided_slice %12 {offsets = [9, 0], sizes = [1, 64], strides = [1, 1]} : vector<16x64xf32> to vector<1x64xf32>
    %153 = arith.mulf %152, %151 : vector<1x64xf32>
    %c9 = arith.constant 9 : index
    %c0_38 = arith.constant 0 : index
    %154 = vector.load %arg12[%c9, %c0_38] : memref<16x64xf32, #tpu.memory_space<vmem>>, vector<1x64xf32>
    tpu.vector_store %arg12[%c9, %c0_38], %153 {strides = array<i32>} : memref<16x64xf32, #tpu.memory_space<vmem>>, vector<1x64xf32>,
    %155 = vector.extract_strided_slice %14 {offsets = [9, 0], sizes = [1, 64], strides = [1, 1]} : vector<16x64xf32> to vector<1x64xf32>
    %156 = arith.mulf %155, %151 : vector<1x64xf32>
    %157 = vector.extract_strided_slice %21 {offsets = [9, 0], sizes = [1, 1], strides = [1, 1]} : vector<16x1xf32> to vector<1x1xf32>
    %158 = vector.broadcast %157 : vector<1x1xf32> to vector<1x64xf32>
    %159 = arith.mulf %153, %158 : vector<1x64xf32>
    %160 = arith.addf %156, %159 : vector<1x64xf32>
    %161 = vector.extract_strided_slice %6 {offsets = [9, 0], sizes = [1, 64], strides = [1, 1]} : vector<16x64xf32> to vector<1x64xf32>
    %162 = vector.extract_strided_slice %23 {offsets = [9, 0], sizes = [1, 1], strides = [1, 1]} : vector<16x1xf32> to vector<1x1xf32>
    %163 = vector.broadcast %162 : vector<1x1xf32> to vector<1x64xf32>
    %164 = arith.mulf %161, %163 : vector<1x64xf32>
    %165 = arith.addf %160, %164 : vector<1x64xf32>
    %166 = vector.extract_strided_slice %12 {offsets = [10, 0], sizes = [1, 64], strides = [1, 1]} : vector<16x64xf32> to vector<1x64xf32>
    %167 = arith.mulf %166, %165 : vector<1x64xf32>
    %c10 = arith.constant 10 : index
    %c0_39 = arith.constant 0 : index
    %168 = vector.load %arg12[%c10, %c0_39] : memref<16x64xf32, #tpu.memory_space<vmem>>, vector<1x64xf32>
    tpu.vector_store %arg12[%c10, %c0_39], %167 {strides = array<i32>} : memref<16x64xf32, #tpu.memory_space<vmem>>, vector<1x64xf32>,
    %169 = vector.extract_strided_slice %14 {offsets = [10, 0], sizes = [1, 64], strides = [1, 1]} : vector<16x64xf32> to vector<1x64xf32>
    %170 = arith.mulf %169, %165 : vector<1x64xf32>
    %171 = vector.extract_strided_slice %21 {offsets = [10, 0], sizes = [1, 1], strides = [1, 1]} : vector<16x1xf32> to vector<1x1xf32>
    %172 = vector.broadcast %171 : vector<1x1xf32> to vector<1x64xf32>
    %173 = arith.mulf %167, %172 : vector<1x64xf32>
    %174 = arith.addf %170, %173 : vector<1x64xf32>
    %175 = vector.extract_strided_slice %6 {offsets = [10, 0], sizes = [1, 64], strides = [1, 1]} : vector<16x64xf32> to vector<1x64xf32>
    %176 = vector.extract_strided_slice %23 {offsets = [10, 0], sizes = [1, 1], strides = [1, 1]} : vector<16x1xf32> to vector<1x1xf32>
    %177 = vector.broadcast %176 : vector<1x1xf32> to vector<1x64xf32>
    %178 = arith.mulf %175, %177 : vector<1x64xf32>
    %179 = arith.addf %174, %178 : vector<1x64xf32>
    %180 = vector.extract_strided_slice %12 {offsets = [11, 0], sizes = [1, 64], strides = [1, 1]} : vector<16x64xf32> to vector<1x64xf32>
    %181 = arith.mulf %180, %179 : vector<1x64xf32>
    %c11 = arith.constant 11 : index
    %c0_40 = arith.constant 0 : index
    %182 = vector.load %arg12[%c11, %c0_40] : memref<16x64xf32, #tpu.memory_space<vmem>>, vector<1x64xf32>
    tpu.vector_store %arg12[%c11, %c0_40], %181 {strides = array<i32>} : memref<16x64xf32, #tpu.memory_space<vmem>>, vector<1x64xf32>,
    %183 = vector.extract_strided_slice %14 {offsets = [11, 0], sizes = [1, 64], strides = [1, 1]} : vector<16x64xf32> to vector<1x64xf32>
    %184 = arith.mulf %183, %179 : vector<1x64xf32>
    %185 = vector.extract_strided_slice %21 {offsets = [11, 0], sizes = [1, 1], strides = [1, 1]} : vector<16x1xf32> to vector<1x1xf32>
    %186 = vector.broadcast %185 : vector<1x1xf32> to vector<1x64xf32>
    %187 = arith.mulf %181, %186 : vector<1x64xf32>
    %188 = arith.addf %184, %187 : vector<1x64xf32>
    %189 = vector.extract_strided_slice %6 {offsets = [11, 0], sizes = [1, 64], strides = [1, 1]} : vector<16x64xf32> to vector<1x64xf32>
    %190 = vector.extract_strided_slice %23 {offsets = [11, 0], sizes = [1, 1], strides = [1, 1]} : vector<16x1xf32> to vector<1x1xf32>
    %191 = vector.broadcast %190 : vector<1x1xf32> to vector<1x64xf32>
    %192 = arith.mulf %189, %191 : vector<1x64xf32>
    %193 = arith.addf %188, %192 : vector<1x64xf32>
    %194 = vector.extract_strided_slice %12 {offsets = [12, 0], sizes = [1, 64], strides = [1, 1]} : vector<16x64xf32> to vector<1x64xf32>
    %195 = arith.mulf %194, %193 : vector<1x64xf32>
    %c12 = arith.constant 12 : index
    %c0_41 = arith.constant 0 : index
    %196 = vector.load %arg12[%c12, %c0_41] : memref<16x64xf32, #tpu.memory_space<vmem>>, vector<1x64xf32>
    tpu.vector_store %arg12[%c12, %c0_41], %195 {strides = array<i32>} : memref<16x64xf32, #tpu.memory_space<vmem>>, vector<1x64xf32>,
    %197 = vector.extract_strided_slice %14 {offsets = [12, 0], sizes = [1, 64], strides = [1, 1]} : vector<16x64xf32> to vector<1x64xf32>
    %198 = arith.mulf %197, %193 : vector<1x64xf32>
    %199 = vector.extract_strided_slice %21 {offsets = [12, 0], sizes = [1, 1], strides = [1, 1]} : vector<16x1xf32> to vector<1x1xf32>
    %200 = vector.broadcast %199 : vector<1x1xf32> to vector<1x64xf32>
    %201 = arith.mulf %195, %200 : vector<1x64xf32>
    %202 = arith.addf %198, %201 : vector<1x64xf32>
    %203 = vector.extract_strided_slice %6 {offsets = [12, 0], sizes = [1, 64], strides = [1, 1]} : vector<16x64xf32> to vector<1x64xf32>
    %204 = vector.extract_strided_slice %23 {offsets = [12, 0], sizes = [1, 1], strides = [1, 1]} : vector<16x1xf32> to vector<1x1xf32>
    %205 = vector.broadcast %204 : vector<1x1xf32> to vector<1x64xf32>
    %206 = arith.mulf %203, %205 : vector<1x64xf32>
    %207 = arith.addf %202, %206 : vector<1x64xf32>
    %208 = vector.extract_strided_slice %12 {offsets = [13, 0], sizes = [1, 64], strides = [1, 1]} : vector<16x64xf32> to vector<1x64xf32>
    %209 = arith.mulf %208, %207 : vector<1x64xf32>
    %c13 = arith.constant 13 : index
    %c0_42 = arith.constant 0 : index
    %210 = vector.load %arg12[%c13, %c0_42] : memref<16x64xf32, #tpu.memory_space<vmem>>, vector<1x64xf32>
    tpu.vector_store %arg12[%c13, %c0_42], %209 {strides = array<i32>} : memref<16x64xf32, #tpu.memory_space<vmem>>, vector<1x64xf32>,
    %211 = vector.extract_strided_slice %14 {offsets = [13, 0], sizes = [1, 64], strides = [1, 1]} : vector<16x64xf32> to vector<1x64xf32>
    %212 = arith.mulf %211, %207 : vector<1x64xf32>
    %213 = vector.extract_strided_slice %21 {offsets = [13, 0], sizes = [1, 1], strides = [1, 1]} : vector<16x1xf32> to vector<1x1xf32>
    %214 = vector.broadcast %213 : vector<1x1xf32> to vector<1x64xf32>
    %215 = arith.mulf %209, %214 : vector<1x64xf32>
    %216 = arith.addf %212, %215 : vector<1x64xf32>
    %217 = vector.extract_strided_slice %6 {offsets = [13, 0], sizes = [1, 64], strides = [1, 1]} : vector<16x64xf32> to vector<1x64xf32>
    %218 = vector.extract_strided_slice %23 {offsets = [13, 0], sizes = [1, 1], strides = [1, 1]} : vector<16x1xf32> to vector<1x1xf32>
    %219 = vector.broadcast %218 : vector<1x1xf32> to vector<1x64xf32>
    %220 = arith.mulf %217, %219 : vector<1x64xf32>
    %221 = arith.addf %216, %220 : vector<1x64xf32>
    %222 = vector.extract_strided_slice %12 {offsets = [14, 0], sizes = [1, 64], strides = [1, 1]} : vector<16x64xf32> to vector<1x64xf32>
    %223 = arith.mulf %222, %221 : vector<1x64xf32>
    %c14 = arith.constant 14 : index
    %c0_43 = arith.constant 0 : index
    %224 = vector.load %arg12[%c14, %c0_43] : memref<16x64xf32, #tpu.memory_space<vmem>>, vector<1x64xf32>
    tpu.vector_store %arg12[%c14, %c0_43], %223 {strides = array<i32>} : memref<16x64xf32, #tpu.memory_space<vmem>>, vector<1x64xf32>,
    %225 = vector.extract_strided_slice %14 {offsets = [14, 0], sizes = [1, 64], strides = [1, 1]} : vector<16x64xf32> to vector<1x64xf32>
    %226 = arith.mulf %225, %221 : vector<1x64xf32>
    %227 = vector.extract_strided_slice %21 {offsets = [14, 0], sizes = [1, 1], strides = [1, 1]} : vector<16x1xf32> to vector<1x1xf32>
    %228 = vector.broadcast %227 : vector<1x1xf32> to vector<1x64xf32>
    %229 = arith.mulf %223, %228 : vector<1x64xf32>
    %230 = arith.addf %226, %229 : vector<1x64xf32>
    %231 = vector.extract_strided_slice %6 {offsets = [14, 0], sizes = [1, 64], strides = [1, 1]} : vector<16x64xf32> to vector<1x64xf32>
    %232 = vector.extract_strided_slice %23 {offsets = [14, 0], sizes = [1, 1], strides = [1, 1]} : vector<16x1xf32> to vector<1x1xf32>
    %233 = vector.broadcast %232 : vector<1x1xf32> to vector<1x64xf32>
    %234 = arith.mulf %231, %233 : vector<1x64xf32>
    %235 = arith.addf %230, %234 : vector<1x64xf32>
    %236 = vector.extract_strided_slice %12 {offsets = [15, 0], sizes = [1, 64], strides = [1, 1]} : vector<16x64xf32> to vector<1x64xf32>
    %237 = arith.mulf %236, %235 : vector<1x64xf32>
    %c15 = arith.constant 15 : index
    %c0_44 = arith.constant 0 : index
    %238 = vector.load %arg12[%c15, %c0_44] : memref<16x64xf32, #tpu.memory_space<vmem>>, vector<1x64xf32>
    tpu.vector_store %arg12[%c15, %c0_44], %237 {strides = array<i32>} : memref<16x64xf32, #tpu.memory_space<vmem>>, vector<1x64xf32>,
    %c0_45 = arith.constant 0 : index
    %c0_46 = arith.constant 0 : index
    %239 = vector.load %arg12[%c0_45, %c0_46] : memref<16x64xf32, #tpu.memory_space<vmem>>, vector<16x64xf32>
    %240 = arith.mulf %6, %18 : vector<16x64xf32>
    %241 = arith.mulf %239, %18 : vector<16x64xf32>
    %cst_47 = arith.constant dense<0.000000e+00> : vector<16x16xf32>
    %242 = tpu.matmul %4, %10, %cst_47 {dimension_numbers = #tpu.dot_dimension_numbers<[1], [1], [0], [0], [0, 0, 1, 0], [], []>} : vector<16x64xf32>, vector<16x64xf32>, vector<16x16xf32> -> vector<16x16xf32>
    %cst_48 = arith.constant dense<0.000000e+00> : vector<16x16xf32>
    %243 = tpu.matmul %4, %8, %cst_48 {dimension_numbers = #tpu.dot_dimension_numbers<[1], [1], [0], [0], [0, 0, 1, 0], [], []>} : vector<16x64xf32>, vector<16x64xf32>, vector<16x16xf32> -> vector<16x16xf32>
    %244 = tpu.iota {dimensions = array<i32: 0>} : vector<16x16xi32>
    %245 = tpu.iota {dimensions = array<i32: 1>} : vector<16x16xi32>
    %246 = arith.cmpi sle, %245, %244 : vector<16x16xi32>
    %247 = arith.extui %246 : vector<16x16xi1> to vector<16x16xi32>
    %248 = arith.sitofp %247 : vector<16x16xi32> to vector<16x16xf32>
    %249 = arith.mulf %242, %248 : vector<16x16xf32>
    %250 = arith.mulf %243, %248 : vector<16x16xf32>
    %cst_49 = arith.constant dense<0.000000e+00> : vector<16x64xf32>
    %251 = tpu.matmul %4, %19, %cst_49 {dimension_numbers = #tpu.dot_dimension_numbers<[1], [0], [0], [1], [0, 0, 1, 1], [], []>} : vector<16x64xf32>, vector<64x64xf32>, vector<16x64xf32> -> vector<16x64xf32>
    %cst_50 = arith.constant dense<0.000000e+00> : vector<16x64xf32>
    %252 = tpu.matmul %249, %241, %cst_50 {dimension_numbers = #tpu.dot_dimension_numbers<[1], [0], [0], [1], [0, 0, 1, 1], [], []>} : vector<16x16xf32>, vector<16x64xf32>, vector<16x64xf32> -> vector<16x64xf32>
    %253 = arith.addf %251, %252 : vector<16x64xf32>
    %cst_51 = arith.constant dense<0.000000e+00> : vector<16x64xf32>
    %254 = tpu.matmul %250, %240, %cst_51 {dimension_numbers = #tpu.dot_dimension_numbers<[1], [0], [0], [1], [0, 0, 1, 1], [], []>} : vector<16x16xf32>, vector<16x64xf32>, vector<16x64xf32> -> vector<16x64xf32>
    %255 = arith.addf %253, %254 : vector<16x64xf32>
    %256 = arith.mulf %16, %255 : vector<16x64xf32>
    %c0_52 = arith.constant 0 : index
    %c0_53 = arith.constant 0 : index
    %c0_54 = arith.constant 0 : index
    %257 = vector.load %arg10[%c0_52, %c0_53, %c0_54] : memref<1x16x64xf32, #tpu.memory_space<vmem>>, vector<1x16x64xf32>
    %258 = vector.shape_cast %257 : vector<1x16x64xf32> to vector<16x64xf32>
    %259 = vector.shape_cast %256 : vector<16x64xf32> to vector<1x16x64xf32>
    tpu.vector_store %arg10[%c0_52, %c0_53, %c0_54], %259 {strides = array<i32>} : memref<1x16x64xf32, #tpu.memory_space<vmem>>, vector<1x16x64xf32>,
    %cst_55 = arith.constant dense<0.000000e+00> : vector<64x64xf32>
    %260 = tpu.matmul %10, %241, %cst_55 {dimension_numbers = #tpu.dot_dimension_numbers<[0], [0], [1], [1], [0, 1, 1, 1], [], []>} : vector<16x64xf32>, vector<16x64xf32>, vector<64x64xf32> -> vector<64x64xf32>
    %cst_56 = arith.constant dense<0.000000e+00> : vector<64x64xf32>
    %261 = tpu.matmul %8, %240, %cst_56 {dimension_numbers = #tpu.dot_dimension_numbers<[0], [0], [1], [1], [0, 1, 1, 1], [], []>} : vector<16x64xf32>, vector<16x64xf32>, vector<64x64xf32> -> vector<64x64xf32>
    %262 = arith.addf %19, %260 : vector<64x64xf32>
    %263 = arith.addf %262, %261 : vector<64x64xf32>
    %264 = vector.extract_strided_slice %16 {offsets = [15, 0], sizes = [1, 64], strides = [1, 1]} : vector<16x64xf32> to vector<1x64xf32>
    %265 = vector.broadcast %264 : vector<1x64xf32> to vector<64x64xf32>
    %266 = arith.mulf %263, %265 : vector<64x64xf32>
    %c0_57 = arith.constant 0 : index
    %c0_58 = arith.constant 0 : index
    %267 = vector.load %arg11[%c0_57, %c0_58] : memref<64x64xf32, #tpu.memory_space<vmem>>, vector<64x64xf32>
    tpu.vector_store %arg11[%c0_57, %c0_58], %266 {strides = array<i32>} : memref<64x64xf32, #tpu.memory_space<vmem>>, vector<64x64xf32>,
    return
  }
  func.func @transform_0(%arg0: i32, %arg1: i32) -> (i32, i32, i32) {
    %c0_i32 = arith.constant 0 : i32
    %c0_i32_0 = arith.constant 0 : i32
    return %arg0, %arg1, %c0_i32 : i32, i32, i32
  }
  func.func @transform_1(%arg0: i32, %arg1: i32) -> (i32, i32, i32) {
    %c0_i32 = arith.constant 0 : i32
    %c0_i32_0 = arith.constant 0 : i32
    return %arg0, %arg1, %c0_i32 : i32, i32, i32
  }
  func.func @transform_2(%arg0: i32, %arg1: i32) -> (i32, i32, i32) {
    %c0_i32 = arith.constant 0 : i32
    %c0_i32_0 = arith.constant 0 : i32
    return %arg0, %arg1, %c0_i32 : i32, i32, i32
  }
  func.func @transform_3(%arg0: i32, %arg1: i32) -> (i32, i32, i32) {
    %c0_i32 = arith.constant 0 : i32
    %c0_i32_0 = arith.constant 0 : i32
    return %arg0, %arg1, %c0_i32 : i32, i32, i32
  }
  func.func @transform_4(%arg0: i32, %arg1: i32) -> (i32, i32, i32) {
    %c0_i32 = arith.constant 0 : i32
    %c0_i32_0 = arith.constant 0 : i32
    return %arg0, %arg1, %c0_i32 : i32, i32, i32
  }
  func.func @transform_5(%arg0: i32, %arg1: i32) -> (i32, i32, i32) {
    %c0_i32 = arith.constant 0 : i32
    %c0_i32_0 = arith.constant 0 : i32
    return %arg0, %arg1, %c0_i32 : i32, i32, i32
  }
  func.func @transform_6(%arg0: i32, %arg1: i32) -> (i32, i32, i32) {
    %c0_i32 = arith.constant 0 : i32
    %c0_i32_0 = arith.constant 0 : i32
    return %arg0, %arg1, %c0_i32 : i32, i32, i32
  }
  func.func @transform_7(%arg0: i32, %arg1: i32) -> (i32, i32, i32) {
    %c0_i32 = arith.constant 0 : i32
    %c0_i32_0 = arith.constant 0 : i32
    return %arg0, %arg1, %c0_i32 : i32, i32, i32
  }
  func.func @transform_8(%arg0: i32, %arg1: i32) -> (i32, i32, i32) {
    %c0_i32 = arith.constant 0 : i32
    %c0_i32_0 = arith.constant 0 : i32
    return %arg0, %arg1, %c0_i32 : i32, i32, i32
  }
}

</mosaic_0001>

<bundles_post_ra>
// kernel: tpu_custom_call.1
= control target key start
LH: loop header
LB: loop body
LE: loop exit
PB: predicated region body
PF: predicated region fallthrough
CT: control target
= control target key end

     0   :  { %s3530_s0 = inlined_call_operand.hbm [shape: f32[4,32,64], index: 0, kind: input, shape index: {}]   ;;  %s3531_s1 = inlined_call_operand.hbm [shape: f32[4,32,64], index: 1, kind: input, shape index: {}]   ;;  %s3532_s2 = inlined_call_operand.hbm [shape: f32[4,32,64], index: 2, kind: input, shape index: {}]   ;;  %s3533_s3 = inlined_call_operand.hbm [shape: f32[4,32,64], index: 3, kind: input, shape index: {}]   ;;  %s3534_s4 = inlined_call_operand.hbm [shape: f32[4,32,64], index: 4, kind: input, shape index: {}]   ;;  %s3535_s5 = inlined_call_operand.hbm [shape: f32[4,32,64], index: 5, kind: input, shape index: {}]   ;;  %s3536_s6 = inlined_call_operand.hbm [shape: f32[4,32,64], index: 6, kind: input, shape index: {}]   ;;  %s3537_s7 = inlined_call_operand.hbm [shape: f32[4,32,64], index: 7, kind: input, shape index: {}]   ;;  %s3538_s8 = inlined_call_operand.hbm [shape: f32[4,32,64], index: 8, kind: output, shape index: {}]  }
   0x1   :  { %3558 = sst [smem:[#allocation35_spill]] %s3531_s1 }
   0x2   :  { %3559 = sst [smem:[#allocation36_spill]] %s3533_s3 }
   0x3   :  { %13 = vsyncpa [#allocation5], 0 }
   0x4   :  { %15 = vsyncpa [#allocation5 + $0x1], 0 }
   0x5   :  { %16 = vsyncpa [#allocation8], 0 }
   0x6   :  { %18 = vsyncpa [#allocation8 + $0x1], 0 }
   0x7   :  { %19 = vsyncpa [#allocation11], 0 }
   0x8   :  { %21 = vsyncpa [#allocation11 + $0x1], 0 }
   0x9   :  { %22 = vsyncpa [#allocation14], 0 }
   0xa   :  { %24 = vsyncpa [#allocation14 + $0x1], 0 }
   0xb   :  { %25 = vsyncpa [#allocation17], 0 }
   0xc   :  { %27 = vsyncpa [#allocation17 + $0x1], 0 }
   0xd   :  { %28 = vsyncpa [#allocation6], 0 }
   0xe   :  { %30 = vsyncpa [#allocation6 + $0x1], 0  ;;  %s2749_s27 = smov 0   ;;  %s2751_s28 = smov 0  }
   0xf   :  { %s2753_s29 = smov 0   ;;  %s2755_s30 = smov 0  }
  0x10   :  { %s2757_s9 = smov 0   ;;  %s2759_s10 = smov 0  }
  0x11   :  { %s2761_s11 = smov 0   ;;  %s2763_s12 = smov 0  }
  0x12 LB: > { %3560 = sst [smem:[#allocation25_spill]] %s2659_s27  ;;  %s2790_s13 = sadd.s32 4294967295, %s2687_s12   ;;  %s2687_s12 = sphi %s2763_s12, %s36_s12   ;;  %s2683_s11 = sphi %s2761_s11, %s3601_s11   ;;  %s2679_s10 = sphi %s2759_s10, %s3605_s10   ;;  %s2675_s9 = sphi %s2757_s9, %s3604_s9   ;;  %s2671_s30 = sphi %s2755_s30, %s3598_s30   ;;  %s2667_s29 = sphi %s2753_s29, %s3597_s29   ;;  %s2663_s28 = sphi %s2751_s28, %s3603_s28   ;;  %s2659_s27 = sphi %s2749_s27, %s3602_s27  }
  0x13   : > { %3561 = sst [smem:[#allocation26_spill]] %s2667_s29  ;;  %s1939_s14 = sadd.s32 4294967294, %s2687_s12  }
  0x14   : > { %3562 = sst [smem:[#allocation27_spill]] %s2679_s10  ;;  %s45_s15 = sadd.s32 1, %s2679_s10 }
  0x15   : > { %3563 = sst [smem:[#allocation28_spill]] %s2683_s11  ;;  %s48_s16 = sadd.s32 1, %s2683_s11 }
  0x16   : > { %3564 = sst [smem:[#allocation29_spill]] %s2687_s12  ;;  %p46_p0 = scmp.ge.s32.totalorder %s45_s15, 2 }
  0x17   : > { %s57_s17 = sadd.s32 1, %s2667_s29  ;;  %p64_p1 = scmp.ne.s32.totalorder %s2667_s29, %s2663_s28 }
  0x18   : > { %p65_p2 = scmp.eq.s32.totalorder %s2687_s12, 0  ;;  %s3607_s15 = smov (%p46_p0, %s45_s15), 0 }
  0x19   : > { %3565 = sst [smem:[#allocation30_spill]] %s3607_s15  ;;  %s3609_s16 = smov (!%p46_p0, %s48_s16), %s2683_s11 }
  0x1a   : > { %s53_s18 = ssub.s32 %s2679_s10, %s3607_s15  ;;  %p2804_p3 = por %p65_p2, %p64_p1 }
  0x1b   : > { %p50_p4 = scmp.ge.s32.totalorder %s3609_s16, 4  ;;  %p70_p5 = scmp.ne.s32.totalorder %s2663_s28, %s2659_s27 }
  0x1c   : > { %p71_p6 = scmp.eq.s32.totalorder %s2790_s13, 0  ;;  %p292_p7 = scmp.eq.s32.totalorder %s2790_s13, 7 }
  0x1d   : > { %s3611_s16 = smov (%p50_p4, %s3609_s16), 0  ;;  %p298_p10 = scmp.eq.s32.totalorder %s1939_s14, 7 }
  0x1e   : > { %3567 = sst [smem:[#allocation31_spill]] %s3611_s16  ;;  %p2814_p8 = por %p71_p6, %p70_p5 }
  0x1f   : > { %p2818_p9 = por %p292_p7, %p64_p1  ;;  %s52_s22 = ssub.s32 %s2683_s11, %s3611_s16 }
  0x20   : > { %s3568_s20 = scalar_select %p2814_p8, 1, 0 }
  0x21   : > { %s3569_s21 = scalar_select %p2818_p9, 1, 0 }
  0x22   : > { %s54_s23 = sor.u32 %s53_s18, %s52_s22  ;;  %p2824_p12 = por %p298_p10, %p70_p5 }
  0x23   : > { %3570 = sst [smem:[#allocation32_spill]] %s3569_s21  ;;  %p55_p11 = scmp.eq.s32.totalorder %s54_s23, 0 }
  0x24   : > { %s3571_s24 = scalar_select %p2824_p12, 1, 0 }
  0x25   : > { %p2261_p13 = scmp.lt.s32.totalorder %s2687_s12, 8  ;;  %s2830_s25 = sand.u32 1, %s2667_s29  }
  0x26   : > { %3572 = sst [smem:[#allocation33_spill]] %s3571_s24  ;;  %s2836_s15 = sshll.u32 %s2830_s25, 4 }
  0x27   : > { %s2833_s26 = scalar_select %p55_p11, %s2667_s29, %s57_s17  }
  0x28   : > { %s1943_s27 = sshll.u32 %s2679_s10, 1  ;;  %s1944_s21 = sshll.u32 %s2683_s11, 2 }
  0x29   : > { %3573 = sst [smem:[#allocation34_spill]] %s2833_s26  ;;  %p2842_p0 = pnand %p2261_p13, %p2804_p3 }
  0x2a   : > { %s328_s18 = sadd.s32 %s1944_s21, %s1943_s27  ;;  %s2849_s23 = sand.u32 1, %s2687_s12  }
  0x2b   : > { %s2846_s22 = sshll.u32 %s328_s18, 7  ;;  %s3575_s1 = sld [smem:[#allocation35_spill]] }
  0x2c   : > { %s345_s19 = scalar_lea.vmem [#allocation7], %s2836_s15  ;;  %p2866_p3 = pneg %p2842_p0 }
  0x2d   : > { %s354_s11 = sshll.u32 %s345_s19, 4  ;;  %s2858_s11 = int_to_ptr.vmem [resolvable:$true] %s354_s11 }
  0x31   : > { %s2855_s26 = scalar_lea.hbm %s3575_s1, %s2846_s22  ;;  %s2338_s10 = scalar_lea.hbm %s3575_s1, 2048 }
  0x32   : > { %s2333_s21 = scalar_lea.hbm %s2855_s26, 256  ;;  %p2339_p6 = scmp.lt.u32.totalorder %s2855_s26, %s3575_s1 }
  0x33   : > { %p2334_p2 = scmp.ne.s32.totalorder %s2855_s26, %s2333_s21  ;;  %p2340_p7 = scmp.lt.u32.totalorder %s2338_s10, %s2333_s21 }
  0x34   : > { %p2342_p11 = scmp.lt.u32.totalorder %s2333_s21, %s2855_s26 }
  0x35   : > { %p2336_p4 = pnand %p2866_p3, %p2334_p2  ;;  %p2341_p10 = por %p2340_p7, %p2339_p6 }
  0x37   : > { %p2337_p5 = pneg %p2336_p4  ;;  %p2343_p13 = por %p2342_p11, %p2341_p10 }
  0x39   : > { %p2344_p1 = pnand %p2343_p13, %p2337_p5 }
  0x3b   : > { %2347 = shalt.err (!%p2344_p1)
}
  0x3c   : > { %s2348_s27 = scalar_lea.vmem %s2858_s11, 256  ;;  %s2689_s16 = smov [#allocation7]  }
  0x3d   : > { %p2349_p2 = scmp.ne.s32.totalorder %s2858_s11, %s2348_s27  ;;  %s2353_s17 = sshll.u32 %s2689_s16, 4  ;;  %s2354_s17 = int_to_ptr.vmem [resolvable:$false] %s2353_s17 }
  0x3e   : > { %s2355_s29 = scalar_lea.vmem %s2354_s17, 512  ;;  %p2356_p9 = scmp.lt.s32.totalorder %s2858_s11, %s2354_s17 }
  0x3f   : > { %p2351_p4 = pnand %p2349_p2, %p2866_p3  ;;  %p2357_p8 = scmp.lt.s32.totalorder %s2355_s29, %s2348_s27 }
  0x41   : > { %p2352_p12 = pneg %p2351_p4  ;;  %p2358_p6 = por %p2357_p8, %p2356_p9 }
  0x43   : > { %p2359_p7 = pnand %p2358_p6, %p2352_p12 }
  0x45   : > { %2362 = shalt.err (!%p2359_p7)
}
  0x46   : > { %s3550_s10 = smov 128   ;;  %s3552_s21 = smov 8  }
  0x47   : > { %s3577_s27 = scalar_lea.sflag [#allocation8], %s2849_s23  ;;  %p500_p8 = scmp.lt.s32.totalorder %s2687_s12, 9 }
  0x48   : > { %2238 = dma.hbm_to_vmem [thread:$0]  (!%p2842_p0), %s2855_s26, 256, %s2858_s11, %s3577_s27, %s3550_s10, %s3550_s10, %s3552_s21  }
  0x49   : > { %s3578_s3 = sld [smem:[#allocation36_spill]]  ;;  %p3579_p9 = scmp.ge.s32.totalorder %s2687_s12, 1 }
  0x4a   : > { %s391_s1 = scalar_lea.vmem [#allocation10], %s2836_s15  ;;  %s3556_s11 = scalar_lea.sflag [#allocation11], %s2849_s23 }
  0x4b   : > { %p2903_p12 = pnand %p3579_p9, %p500_p8  ;;  %s400_s24 = sshll.u32 %s391_s1, 4  ;;  %s2908_s24 = int_to_ptr.vmem [resolvable:$true] %s400_s24 }
  0x4d   : > { %s3580_s29 = scalar_select %p2903_p12, 1, 0 }
  0x4f   : > { %s2899_s17 = scalar_lea.hbm %s3578_s3, %s2846_s22  ;;  %s2368_s16 = scalar_lea.hbm %s3578_s3, 2048 }
  0x50   : > { %s2363_s26 = scalar_lea.hbm %s2899_s17, 256  ;;  %p2369_p11 = scmp.lt.u32.totalorder %s2899_s17, %s3578_s3 }
  0x51   : > { %p2364_p1 = scmp.ne.s32.totalorder %s2899_s17, %s2363_s26  ;;  %p2370_p13 = scmp.lt.u32.totalorder %s2368_s16, %s2363_s26 }
  0x52   : > { %p2372_p4 = scmp.lt.u32.totalorder %s2363_s26, %s2899_s17 }
  0x53   : > { %p2366_p5 = pnand %p2364_p1, %p2866_p3  ;;  %p2371_p2 = por %p2370_p13, %p2369_p11 }
  0x55   : > { %p2367_p10 = pneg %p2366_p5  ;;  %p2373_p6 = por %p2372_p4, %p2371_p2 }
  0x57   : > { %p2374_p7 = pnand %p2373_p6, %p2367_p10 }
  0x59   : > { %2377 = shalt.err (!%p2374_p7)
}
  0x5a   : > { %s2378_s1 = scalar_lea.vmem %s2908_s24, 256  ;;  %s2692_s27 = smov [#allocation10]  }
  0x5b   : > { %p2379_p8 = scmp.ne.s32.totalorder %s2908_s24, %s2378_s1  ;;  %s2383_s19 = sshll.u32 %s2692_s27, 4  ;;  %s2384_s19 = int_to_ptr.vmem [resolvable:$false] %s2383_s19 }
  0x5c   : > { %s2385_s10 = scalar_lea.vmem %s2384_s19, 512  ;;  %p2386_p5 = scmp.lt.s32.totalorder %s2908_s24, %s2384_s19 }
  0x5d   : > { %p2381_p9 = pnand %p2379_p8, %p2866_p3  ;;  %p2387_p12 = scmp.lt.s32.totalorder %s2385_s10, %s2378_s1 }
  0x5f   : > { %p2382_p1 = pneg %p2381_p9  ;;  %p2388_p11 = por %p2387_p12, %p2386_p5 }
  0x61   : > { %p2389_p13 = pnand %p2388_p11, %p2382_p1 }
  0x63   : > { %2392 = shalt.err (!%p2389_p13)
}
  0x64   : > { %s3581_s21 = smov 8   ;;  %s3582_s26 = smov 128  }
  0x65   : > { %2244 = dma.hbm_to_vmem [thread:$0]  (!%p2842_p0), %s2899_s17, 256, %s2908_s24, %s3556_s11, %s3582_s26, %s3582_s26, %s3581_s21  }
  0x66   : > { %s2941_s1 = scalar_lea.hbm %s3535_s5, %s2846_s22  ;;  %s437_s19 = scalar_lea.vmem [#allocation13], %s2836_s15 }
  0x67   : > { %s446_s10 = sshll.u32 %s437_s19, 4  ;;  %s3557_s3 = scalar_lea.sflag [#allocation14], %s2849_s23  ;;  %s2944_s10 = int_to_ptr.vmem [resolvable:$true] %s446_s10 }
  0x68   : > { %s2393_s12 = scalar_lea.hbm %s2941_s1, 256  ;;  %s2398_s16 = scalar_lea.hbm %s3535_s5, 2048 }
  0x69   : > { %p2394_p12 = scmp.ne.s32.totalorder %s2941_s1, %s2393_s12  ;;  %p2399_p4 = scmp.lt.u32.totalorder %s2941_s1, %s3535_s5 }
  0x6a   : > { %p2400_p6 = scmp.lt.u32.totalorder %s2398_s16, %s2393_s12  ;;  %p2402_p8 = scmp.lt.u32.totalorder %s2393_s12, %s2941_s1 }
  0x6b   : > { %p2396_p10 = pnand %p2394_p12, %p2866_p3 }
  0x6c   : > { %p2401_p7 = por %p2400_p6, %p2399_p4 }
  0x6d   : > { %p2397_p2 = pneg %p2396_p10 }
  0x6e   : > { %p2403_p9 = por %p2402_p8, %p2401_p7 }
  0x70   : > { %p2404_p1 = pnand %p2403_p9, %p2397_p2 }
  0x72   : > { %2407 = shalt.err (!%p2404_p1)
}
  0x73   : > { %s2408_s19 = scalar_lea.vmem %s2944_s10, 256  ;;  %s2693_s24 = smov [#allocation13]  }
  0x74   : > { %p2409_p5 = scmp.ne.s32.totalorder %s2944_s10, %s2408_s19  ;;  %s2413_s17 = sshll.u32 %s2693_s24, 4  ;;  %s2414_s17 = int_to_ptr.vmem [resolvable:$false] %s2413_s17 }
  0x75   : > { %s2415_s11 = scalar_lea.vmem %s2414_s17, 512  ;;  %p2416_p12 = scmp.lt.s32.totalorder %s2944_s10, %s2414_s17 }
  0x76   : > { %p2411_p11 = pnand %p2409_p5, %p2866_p3  ;;  %p2417_p10 = scmp.lt.s32.totalorder %s2415_s11, %s2408_s19 }
  0x78   : > { %p2412_p13 = pneg %p2411_p11  ;;  %p2418_p4 = por %p2417_p10, %p2416_p12 }
  0x7a   : > { %p2419_p6 = pnand %p2418_p4, %p2412_p13 }
  0x7c   : > { %2422 = shalt.err (!%p2419_p6)
}
  0x7d   : > { %2250 = dma.hbm_to_vmem [thread:$0]  (!%p2842_p0), %s2941_s1, 256, %s2944_s10, %s3557_s3, %s3582_s26, %s3582_s26, %s3581_s21  }
  0x7e   : > { %s2977_s27 = scalar_lea.hbm %s3530_s0, %s2846_s22  ;;  %s322_s19 = scalar_lea.vmem [#allocation4], %s2836_s15 }
  0x7f   : > { %s331_s24 = sshll.u32 %s322_s19, 4  ;;  %s319_s17 = scalar_lea.sflag [#allocation5], %s2830_s25  ;;  %s2980_s24 = int_to_ptr.vmem [resolvable:$true] %s331_s24 }
  0x80   : > { %s2423_s11 = scalar_lea.hbm %s2977_s27, 256  ;;  %s2428_s12 = scalar_lea.hbm %s3530_s0, 2048 }
  0x81   : > { %p2424_p2 = scmp.ne.s32.totalorder %s2977_s27, %s2423_s11  ;;  %p2429_p9 = scmp.lt.u32.totalorder %s2977_s27, %s3530_s0 }
  0x82   : > { %p2430_p1 = scmp.lt.u32.totalorder %s2428_s12, %s2423_s11  ;;  %p2432_p11 = scmp.lt.u32.totalorder %s2423_s11, %s2977_s27 }
  0x83   : > { %p2426_p7 = pnand %p2424_p2, %p2866_p3 }
  0x84   : > { %p2431_p5 = por %p2430_p1, %p2429_p9 }
  0x85   : > { %p2427_p8 = pneg %p2426_p7 }
  0x86   : > { %p2433_p13 = por %p2432_p11, %p2431_p5 }
  0x88   : > { %p2434_p12 = pnand %p2433_p13, %p2427_p8 }
  0x8a   : > { %2437 = shalt.err (!%p2434_p12)
}
  0x8b   : > { %s2438_s19 = scalar_lea.vmem %s2980_s24, 256  ;;  %s2694_s1 = smov [#allocation4]  }
  0x8c   : > { %p2439_p10 = scmp.ne.s32.totalorder %s2980_s24, %s2438_s19  ;;  %s2443_s10 = sshll.u32 %s2694_s1, 4  ;;  %s2444_s10 = int_to_ptr.vmem [resolvable:$false] %s2443_s10 }
  0x8d   : > { %s2445_s3 = scalar_lea.vmem %s2444_s10, 512  ;;  %p2446_p2 = scmp.lt.s32.totalorder %s2980_s24, %s2444_s10 }
  0x8e   : > { %p2441_p4 = pnand %p2439_p10, %p2866_p3  ;;  %p2447_p7 = scmp.lt.s32.totalorder %s2445_s3, %s2438_s19 }
  0x90   : > { %p2442_p6 = pneg %p2441_p4  ;;  %p2448_p9 = por %p2447_p7, %p2446_p2 }
  0x92   : > { %p2449_p1 = pnand %p2448_p9, %p2442_p6 }
  0x94   : > { %2452 = shalt.err (!%p2449_p1)
}
  0x95   : > { %2235 = dma.hbm_to_vmem [thread:$0]  (!%p2842_p0), %s2977_s27, 256, %s2980_s24, %s319_s17, %s3582_s26, %s3582_s26, %s3581_s21  }
  0x96   : > { %s3013_s16 = scalar_lea.hbm %s3532_s2, %s2846_s22  ;;  %s368_s19 = scalar_lea.vmem [#allocation9], %s2836_s15 }
  0x97   : > { %s377_s1 = sshll.u32 %s368_s19, 4  ;;  %s2453_s10 = scalar_lea.hbm %s3013_s16, 256  ;;  %s3016_s1 = int_to_ptr.vmem [resolvable:$true] %s377_s1 }
  0x98   : > { %p2454_p8 = scmp.ne.s32.totalorder %s3013_s16, %s2453_s10  ;;  %s2458_s24 = scalar_lea.hbm %s3532_s2, 2048 }
  0x99   : > { %p2459_p13 = scmp.lt.u32.totalorder %s3013_s16, %s3532_s2  ;;  %p2460_p12 = scmp.lt.u32.totalorder %s2458_s24, %s2453_s10 }
  0x9a   : > { %p2456_p5 = pnand %p2454_p8, %p2866_p3  ;;  %p2462_p4 = scmp.lt.u32.totalorder %s2453_s10, %s3013_s16 }
  0x9b   : > { %p2461_p10 = por %p2460_p12, %p2459_p13 }
  0x9c   : > { %p2457_p11 = pneg %p2456_p5 }
  0x9d   : > { %p2463_p6 = por %p2462_p4, %p2461_p10 }
  0x9f   : > { %p2464_p2 = pnand %p2463_p6, %p2457_p11 }
  0xa1   : > { %2467 = shalt.err (!%p2464_p2)
}
  0xa2   : > { %s2468_s12 = scalar_lea.vmem %s3016_s1, 256  ;;  %s2695_s19 = smov [#allocation9]  }
  0xa3   : > { %p2469_p7 = scmp.ne.s32.totalorder %s3016_s1, %s2468_s12  ;;  %s2473_s3 = sshll.u32 %s2695_s19, 4  ;;  %s2474_s3 = int_to_ptr.vmem [resolvable:$false] %s2473_s3 }
  0xa4   : > { %s2475_s27 = scalar_lea.vmem %s2474_s3, 512  ;;  %p2476_p8 = scmp.lt.s32.totalorder %s3016_s1, %s2474_s3 }
  0xa5   : > { %p2471_p9 = pnand %p2469_p7, %p2866_p3  ;;  %p2477_p5 = scmp.lt.s32.totalorder %s2475_s27, %s2468_s12 }
  0xa7   : > { %p2472_p1 = pneg %p2471_p9  ;;  %p2478_p13 = por %p2477_p5, %p2476_p8 }
  0xa9   : > { %p2479_p12 = pnand %p2478_p13, %p2472_p1 }
  0xab   : > { %2482 = shalt.err (!%p2479_p12)
}
  0xac   : > { %s3583_s10 = scalar_lea.sflag [#allocation8], %s2849_s23  ;;  %s3048_s11 = scalar_lea.hbm %s3534_s4, %s2846_s22 }
  0xad   : > { %2241 = dma.hbm_to_vmem [thread:$0]  (!%p2842_p0), %s3013_s16, 256, %s3016_s1, %s3583_s10, %s3582_s26, %s3582_s26, %s3581_s21  }
  0xae   : > { %s414_s12 = scalar_lea.vmem [#allocation12], %s2836_s15  ;;  %s2483_s3 = scalar_lea.hbm %s3048_s11, 256 }
  0xaf   : > { %s423_s19 = sshll.u32 %s414_s12, 4  ;;  %p2484_p11 = scmp.ne.s32.totalorder %s3048_s11, %s2483_s3  ;;  %s3051_s19 = int_to_ptr.vmem [resolvable:$true] %s423_s19 }
  0xb0   : > { %s2488_s1 = scalar_lea.hbm %s3534_s4, 2048  ;;  %p2489_p6 = scmp.lt.u32.totalorder %s3048_s11, %s3534_s4 }
  0xb1   : > { %p2486_p10 = pnand %p2484_p11, %p2866_p3  ;;  %p2490_p2 = scmp.lt.u32.totalorder %s2488_s1, %s2483_s3 }
  0xb2   : > { %p2492_p9 = scmp.lt.u32.totalorder %s2483_s3, %s3048_s11 }
  0xb3   : > { %p2487_p4 = pneg %p2486_p10  ;;  %p2491_p7 = por %p2490_p2, %p2489_p6 }
  0xb5   : > { %p2493_p1 = por %p2492_p9, %p2491_p7 }
  0xb7   : > { %p2494_p8 = pnand %p2493_p1, %p2487_p4 }
  0xb9   : > { %2497 = shalt.err (!%p2494_p8)
}
  0xba   : > { %s2498_s17 = scalar_lea.vmem %s3051_s19, 256  ;;  %s2696_s12 = smov [#allocation12]  }
  0xbb   : > { %p2499_p5 = scmp.ne.s32.totalorder %s3051_s19, %s2498_s17  ;;  %s2503_s27 = sshll.u32 %s2696_s12, 4  ;;  %s2504_s27 = int_to_ptr.vmem [resolvable:$false] %s2503_s27 }
  0xbc   : > { %s2505_s16 = scalar_lea.vmem %s2504_s27, 512  ;;  %p2506_p11 = scmp.lt.s32.totalorder %s3051_s19, %s2504_s27 }
  0xbd   : > { %p2501_p13 = pnand %p2499_p5, %p2866_p3  ;;  %p2507_p10 = scmp.lt.s32.totalorder %s2505_s16, %s2498_s17 }
  0xbf   : > { %p2502_p12 = pneg %p2501_p13  ;;  %p2508_p6 = por %p2507_p10, %p2506_p11 }
  0xc1   : > { %p2509_p2 = pnand %p2508_p6, %p2502_p12 }
  0xc3   : > { %2512 = shalt.err (!%p2509_p2)
}
  0xc4   : > { %s3584_s3 = scalar_lea.sflag [#allocation11], %s2849_s23  ;;  %s3083_s24 = scalar_lea.hbm %s3536_s6, %s2846_s22 }
  0xc5   : > { %2247 = dma.hbm_to_vmem [thread:$0]  (!%p2842_p0), %s3048_s11, 256, %s3051_s19, %s3584_s3, %s3582_s26, %s3582_s26, %s3581_s21  }
  0xc6   : > { %s460_s17 = scalar_lea.vmem [#allocation15], %s2836_s15  ;;  %s2513_s27 = scalar_lea.hbm %s3083_s24, 256 }
  0xc7   : > { %s469_s12 = sshll.u32 %s460_s17, 4  ;;  %p2514_p4 = scmp.ne.s32.totalorder %s3083_s24, %s2513_s27  ;;  %s3086_s12 = int_to_ptr.vmem [resolvable:$true] %s469_s12 }
  0xc8   : > { %s2518_s19 = scalar_lea.hbm %s3536_s6, 2048  ;;  %p2519_p1 = scmp.lt.u32.totalorder %s3083_s24, %s3536_s6 }
  0xc9   : > { %p2516_p7 = pnand %p2514_p4, %p2866_p3  ;;  %p2520_p8 = scmp.lt.u32.totalorder %s2518_s19, %s2513_s27 }
  0xca   : > { %p2522_p13 = scmp.lt.u32.totalorder %s2513_s27, %s3083_s24 }
  0xcb   : > { %p2517_p9 = pneg %p2516_p7  ;;  %p2521_p5 = por %p2520_p8, %p2519_p1 }
  0xcd   : > { %p2523_p12 = por %p2522_p13, %p2521_p5 }
  0xcf   : > { %p2524_p11 = pnand %p2523_p12, %p2517_p9 }
  0xd1   : > { %2527 = shalt.err (!%p2524_p11)
}
  0xd2   : > { %s2528_s10 = scalar_lea.vmem %s3086_s12, 256  ;;  %s2697_s17 = smov [#allocation15]  }
  0xd3   : > { %p2529_p10 = scmp.ne.s32.totalorder %s3086_s12, %s2528_s10  ;;  %s2533_s16 = sshll.u32 %s2697_s17, 4  ;;  %s2534_s16 = int_to_ptr.vmem [resolvable:$false] %s2533_s16 }
  0xd4   : > { %s2535_s11 = scalar_lea.vmem %s2534_s16, 512  ;;  %p2536_p4 = scmp.lt.s32.totalorder %s3086_s12, %s2534_s16 }
  0xd5   : > { %p2531_p6 = pnand %p2529_p10, %p2866_p3  ;;  %p2537_p7 = scmp.lt.s32.totalorder %s2535_s11, %s2528_s10 }
  0xd7   : > { %p2532_p2 = pneg %p2531_p6  ;;  %p2538_p1 = por %p2537_p7, %p2536_p4 }
  0xd9   : > { %p2539_p8 = pnand %p2538_p1, %p2532_p2 }
  0xdb   : > { %2542 = shalt.err (!%p2539_p8)
}
  0xdc   : > { %s3585_s27 = scalar_lea.sflag [#allocation14], %s2849_s23  ;;  %s3118_s1 = scalar_lea.hbm %s3537_s7, %s2846_s22 }
  0xdd   : > { %2253 = dma.hbm_to_vmem [thread:$0]  (!%p2842_p0), %s3083_s24, 256, %s3086_s12, %s3585_s27, %s3582_s26, %s3582_s26, %s3581_s21  }
  0xde   : > { %s483_s10 = scalar_lea.vmem [#allocation16], %s2836_s15  ;;  %s480_s23 = scalar_lea.sflag [#allocation17], %s2830_s25 }
  0xdf   : > { %s492_s17 = sshll.u32 %s483_s10, 4  ;;  %s2543_s16 = scalar_lea.hbm %s3118_s1, 256  ;;  %s3121_s17 = int_to_ptr.vmem [resolvable:$true] %s492_s17 }
  0xe0   : > { %p2544_p9 = scmp.ne.s32.totalorder %s3118_s1, %s2543_s16  ;;  %s2548_s11 = scalar_lea.hbm %s3537_s7, 2048 }
  0xe1   : > { %p2549_p12 = scmp.lt.u32.totalorder %s3118_s1, %s3537_s7  ;;  %p2550_p11 = scmp.lt.u32.totalorder %s2548_s11, %s2543_s16 }
  0xe2   : > { %p2546_p5 = pnand %p2544_p9, %p2866_p3  ;;  %p2552_p6 = scmp.lt.u32.totalorder %s2543_s16, %s3118_s1 }
  0xe3   : > { %p2551_p10 = por %p2550_p11, %p2549_p12 }
  0xe4   : > { %p2547_p13 = pneg %p2546_p5 }
  0xe5   : > { %p2553_p2 = por %p2552_p6, %p2551_p10 }
  0xe7   : > { %p2554_p4 = pnand %p2553_p2, %p2547_p13 }
  0xe9   : > { %2557 = shalt.err (!%p2554_p4)
}
  0xea   : > { %s2558_s15 = scalar_lea.vmem %s3121_s17, 256  ;;  %s2698_s19 = smov [#allocation16]  }
  0xeb   : > { %p2559_p7 = scmp.ne.s32.totalorder %s3121_s17, %s2558_s15  ;;  %s2563_s3 = sshll.u32 %s2698_s19, 4  ;;  %s2564_s3 = int_to_ptr.vmem [resolvable:$false] %s2563_s3 }
  0xec   : > { %s2565_s10 = scalar_lea.vmem %s2564_s3, 512  ;;  %p2566_p9 = scmp.lt.s32.totalorder %s3121_s17, %s2564_s3 }
  0xed   : > { %p2561_p1 = pnand %p2559_p7, %p2866_p3  ;;  %p2567_p5 = scmp.lt.s32.totalorder %s2565_s10, %s2558_s15 }
  0xef   : > { %p2562_p8 = pneg %p2561_p1  ;;  %p2568_p12 = por %p2567_p5, %p2566_p9 }
  0xf1   : > { %p2569_p11 = pnand %p2568_p12, %p2562_p8 }
  0xf3   : > { %2572 = shalt.err (!%p2569_p11)
}
  0xf4   : > { %2256 = dma.hbm_to_vmem [thread:$0]  (!%p2842_p0), %s3118_s1, 256, %s3121_s17, %s480_s23, %s3582_s26, %s3582_s26, %s3581_s21  }
  0xf5   : > { %p3586_p3 = scmp.ne.s32.totalorder %s3580_s29, 0 }
  0xf6   : > { %s3153_s18 = sand.u32 (!%p3586_p3), 1, %s2663_s28   ;;  %p3587_p13 = scmp.ne.s32.totalorder (!%p3586_p3), %s3568_s20, 0 }
  0xf7   : > { %504 = sbr.rel (%p3586_p3) target bundleno = 848 (0x350), region = 52  ;;  %s3156_s16 = sshll.u32 (!%p3586_p3), %s3153_s18, 4 }
  0xf8   : > { %s507_s14 = scalar_lea.sflag (!%p3586_p3), [#allocation5], %s3153_s18  ;;  %s510_s24 = scalar_lea.vmem (!%p3586_p3), [#allocation4], %s3156_s16 }
  0xfe   : > { %2634 = dma.done.wait (%p3587_p13), %s507_s14, 256  }
  0xff   : > { %2636 = vsyncadd (%p3587_p13), %s507_s14, 4294967040  ;;  %s515_s25 = sand.u32 1, %s2790_s13   ;;  %s519_s21 = scalar_lea.vmem [#allocation7], %s3156_s16 }
 0x100   : > { %s516_s29 = scalar_lea.sflag [#allocation8], %s515_s25 }
 0x101   : > { %2638 = dma.done.wait (%p3587_p13), %s516_s29, 512  }
 0x102   : > { %2640 = vsyncadd (%p3587_p13), %s516_s29, 4294966784  ;;  %s528_s26 = scalar_lea.vmem [#allocation9], %s3156_s16  ;;  %s534_s1 = scalar_lea.sflag [#allocation11], %s515_s25 }
 0x103   : > { %s537_s17 = scalar_lea.vmem [#allocation10], %s3156_s16 }
 0x104   : > { %2642 = dma.done.wait (%p3587_p13), %s534_s1, 512  }
 0x105   : > { %2644 = vsyncadd (%p3587_p13), %s534_s1, 4294966784  ;;  %s546_s13 = scalar_lea.vmem [#allocation12], %s3156_s16  ;;  %s552_s23 = scalar_lea.sflag [#allocation14], %s515_s25 }
 0x106   : > { %s555_s12 = scalar_lea.vmem [#allocation13], %s3156_s16 }
 0x107   : > { %2646 = dma.done.wait (%p3587_p13), %s552_s23, 512  }
 0x108   : > { %2648 = vsyncadd (%p3587_p13), %s552_s23, 4294966784  ;;  %s564_s11 = scalar_lea.vmem [#allocation15], %s3156_s16  ;;  %s570_s22 = scalar_lea.sflag [#allocation17], %s3153_s18 }
 0x109   : > { %s573_s27 = scalar_lea.vmem [#allocation16], %s3156_s16 }
 0x10a   : > { %2650 = dma.done.wait (%p3587_p13), %s570_s22, 256  }
 0x10b   : > { %2652 = vsyncadd (%p3587_p13), %s570_s22, 4294967040  ;;  %s3190_s15 = scalar_lea.vmem [#allocation18], %s3156_s16  ;;  %p1984_p0 = scmp.ne.s32.totalorder %s2671_s30, 0 }
 0x10c   : > { %vm654_vm0 = vcmask (!%p1984_p0), 523264   ;;  %v2699_v0 = vmov (!%p1984_p0), 0.0  }
 0x10d   : > { %653 = sbr.rel (%p1984_p0) target bundleno = 276 (0x114), region = 88  ;;  %655 = vst.msk [vmem:[#allocation2] sm:$0xff] (!%p1984_p0), %vm654_vm0, %v2699_v0  ;;  %656 = vst.msk [vmem:[#allocation2 + $0x8] sm:$0xff] (!%p1984_p0), %vm654_vm0, %v2699_v0 }
 0x10e   : > { %657 = vst.msk [vmem:[#allocation2 + $0x10] sm:$0xff] (!%p1984_p0), %vm654_vm0, %v2699_v0  ;;  %658 = vst.msk [vmem:[#allocation2 + $0x18] sm:$0xff] (!%p1984_p0), %vm654_vm0, %v2699_v0 }
 0x10f   : > { %659 = vst.msk [vmem:[#allocation2 + $0x20] sm:$0xff] (!%p1984_p0), %vm654_vm0, %v2699_v0  ;;  %660 = vst.msk [vmem:[#allocation2 + $0x28] sm:$0xff] (!%p1984_p0), %vm654_vm0, %v2699_v0 }
 0x110   : > { %661 = vst.msk [vmem:[#allocation2 + $0x30] sm:$0xff] (!%p1984_p0), %vm654_vm0, %v2699_v0  ;;  %662 = vst.msk [vmem:[#allocation2 + $0x38] sm:$0xff] (!%p1984_p0), %vm654_vm0, %v2699_v0 }
 0x114 PF: > { %v669_v1 = vld [vmem:[%s537_s17] sm:$0xff]  ;;  %vm687_vm1 = vcmask 523264   ;;  %v670_v3 = vld [vmem:[%s537_s17 + $0x8] sm:$0xff]  ;;  %vm722_vm3 = vcmask 516096   ;;  %vm733_vm4 = vcmask 517121   ;;  %vm743_vm5 = vcmask 518146  }
 0x115   : > { %v667_v2 = vld [vmem:[%s528_s26] sm:$0xff]  ;;  %v688_v4 = vsel %vm687_vm1, %v669_v1, 0.0  ;;  %v691_v5 = vsel %vm687_vm1, %v670_v3, 0.0  ;;  %v668_v6 = vld [vmem:[%s528_s26 + $0x8] sm:$0xff]  ;;  %v2148_v7 = vpack.c.bf16 %v670_v3, %v669_v1  ;;  %vm3205_vm2 = vmpackc.low %vm687_vm1, %vm687_vm1  ;;  %vm753_vm6 = vcmask 519171   ;;  %s2018_s20 = sshll.u32 %s2671_s30, 1 }
 0x116   : > { %v3211_v9 = vld [vmem:[%s510_s24] sm:$0xff]  ;;  %689 = vadd.xlane.f32.xlu0 %v688_v4  ;;  %692 = vadd.xlane.f32.xlu1 %v691_v5  ;;  %v2154_v10 = vpack.c.bf16 %v668_v6, %v667_v2  ;;  %v694_v11 = vsel %vm687_vm1, %v667_v2, 0.0  ;;  %v697_v12 = vsel %vm687_vm1, %v668_v6, 0.0  ;;  %v3221_v14 = vld [vmem:[#allocation2 + $0x8] sm:$0xff]  ;;  %v3229_v16 = vld [vmem:[#allocation2 + $0x18] sm:$0xff]  ;;  %v1042_v4 = vlaneseq  ;;  %s2019_s19 = sshll.u32 %s2675_s9, 2 }
 0x117   : > { %2150 = vmatprep.subr.msk.bf16.mxu0 %vm3205_vm2, %v2148_v7  ;;  %2073 = vmatprep.mubr.msk.f32.mxu0 %vm687_vm1, %v3211_v9  ;;  %v3219_v13 = vld [vmem:[#allocation2] sm:$0xff]  ;;  %v3223_v15 = vld [vmem:[#allocation2 + $0x10] sm:$0xff]  ;;  %v701_v18 = vsel %vm687_vm1, %v3221_v14, 0.0  ;;  %v705_v22 = vsel %vm687_vm1, %v3229_v16, 0.0  ;;  %v3245_v23 = vld [vmem:[#allocation2 + $0x28] sm:$0xff]  ;;  %vm763_vm8 = vcmask 520196   ;;  %s1672_s3 = sadd.s32 %s2019_s19, %s2018_s20 }
 0x118   : > { %2153 = vmatpush3.bf16.xpose.msk.msra.mxu0 %vm3205_vm2, %v2148_v7  ;;  %2156 = vmatprep.subr.msk.bf16.mxu1 %vm3205_vm2, %v2154_v10  ;;  %v700_v17 = vsel %vm687_vm1, %v3219_v13, 0.0  ;;  %v703_v19 = vsel %vm687_vm1, %v3223_v15, 0.0  ;;  %v3241_v20 = vld [vmem:[#allocation2 + $0x20] sm:$0xff]  ;;  %v3249_v25 = vld [vmem:[%s510_s24 + $0x8] sm:$0xff]  ;;  %v3253_v27 = vld [vmem:[#allocation2 + $0x30] sm:$0xff]  ;;  %v709_v29 = vsel %vm687_vm1, %v3245_v23, 0.0 }
 0x119   : > { %2159 = vmatpush3.bf16.xpose.msk.msra.mxu1 %vm3205_vm2, %v2154_v10  ;;  %2080 = vmatprep.mubr.msk.f32.mxu1 %vm687_vm1, %v3211_v9  ;;  %v702_v21 = vadd.f32 %v701_v18, %v700_v17  ;;  %v707_v26 = vsel %vm687_vm1, %v3241_v20, 0.0  ;;  %v3259_v30 = vld [vmem:[#allocation2 + $0x38] sm:$0xff]  ;;  %v711_v32 = vsel %vm687_vm1, %v3253_v27, 0.0  ;;  %v3269_v42 = vld [vmem:[%s546_s13] sm:$0xff]  ;;  %vm1057_vm9 = vcmask 130048   ;;  %s2020_s30 = sshll.u32 %s1672_s3, 7 }
 0x11a   : > { %695 = vadd.xlane.f32.xlu0 %v694_v11  ;;  %698 = vadd.xlane.f32.xlu1 %v697_v12  ;;  %v713_v34 = vsel %vm687_vm1, %v3259_v30, 0.0  ;;  %v3275_v45 = vld [vmem:[%s555_s12] sm:$0xff]  ;;  %v3304_v7 = vld [vmem:[%s573_s27 + $0x8] sm:$0xff]  ;;  %v3312_v11 = vshrl.u32 %v1042_v4, 7  ;;  %vm773_vm10 = vcmask 521221   ;;  %vm783_vm11 = vcmask 522246   ;;  %s3456_s24 = scalar_lea.hbm %s3538_s8, %s2020_s30 }
 0x11b   : > { %v704_v24 = vadd.f32 %v703_v19, %v702_v21  ;;  %v665_v49 = vld [vmem:[%s519_s21] sm:$0xff]  ;;  %v3308_v8 = vld [vmem:[%s519_s21 + $0x8] sm:$0xff]  ;;  %v1046_v19 = vand.u32 127, %v1042_v4  ;;  %vm793_vm12 = vcmask 523271   ;;  %s1675_s9 = sshll.u32 %s3190_s15, 4  ;;  %s3590_s16 = sld [smem:[#allocation32_spill]]  ;;  %s3458_s9 = int_to_ptr.vmem [resolvable:$true] %s1675_s9 }
 0x11c   : > { %v871_v10 = vmul.f32 %v3304_v7, %v3308_v8  ;;  %v1044_v18 = vadd.s32 8, %v3312_v11  ;;  %s1660_s25 = scalar_lea.sflag [#allocation6], %s3153_s18  ;;  %s2573_s29 = scalar_lea.vmem %s3458_s9, 256 }
 0x11d   : > { %v706_v28 = vadd.f32 %v705_v22, %v704_v24  ;;  %vm1047_vm13 = vcmp.le.s32.totalorder %v1046_v19, %v3312_v11  ;;  %p2574_p10 = scmp.ne.s32.totalorder %s3458_s9, %s2573_s29  ;;  %s2701_s21 = smov [#allocation18]  }
 0x11e   : > { %vm1048_vm7 = vcmp.le.s32.totalorder %v1046_v19, %v1044_v18  ;;  %s2577_s26 = sshll.u32 %s2701_s21, 4  ;;  %s2578_s26 = int_to_ptr.vmem [resolvable:$false] %s2577_s26 }
 0x11f   : > { %2074 = vmatmul.mubr.msk.f32.vlgmr.msra.gmra.mrb[0].mxu0 %vm687_vm1, %v3249_v25  ;;  %v708_v31 = vadd.f32 %v707_v26, %v706_v28  ;;  %v2700_v28 = vmov 0.0   ;;  %s2579_s1 = scalar_lea.vmem %s2578_s26, 512  ;;  %p2580_p7 = scmp.lt.s32.totalorder %s3458_s9, %s2578_s26 }
 0x120   : > { %2081 = vmatmul.mubr.msk.f32.vlgmr.msra.gmra.mrb[0].mxu1 %vm687_vm1, %v3249_v25  ;;  %p2581_p1 = scmp.lt.s32.totalorder %s2579_s1, %s2573_s29 }
 0x121   : > { %v710_v33 = vadd.f32 %v709_v29, %v708_v31  ;;  %v1994_v29 = vsel %vm1048_vm7, 1.0, %v2700_v28  ;;  %p3591_p6 = scmp.ne.s32.totalorder %s3590_s16, 0 }
 0x122   : > { %p2582_p8 = por %p2581_p1, %p2580_p7 }
 0x123   : > { %v712_v35 = vadd.f32 %v711_v32, %v710_v33  ;;  %p2575_p2 = pnand %p2574_p10, %p3591_p6 }
 0x125   : > { %v714_v36 = vadd.f32 %v713_v34, %v712_v35  ;;  %p2576_p4 = pneg %p2575_p2 }
 0x127   : > { %v715_v37 = vrot.slane %v714_v36, 4  ;;  %p2583_p9 = pnand %p2582_p8, %p2576_p4 }
 0x129   : > { %v716_v38 = vadd.f32 %v715_v37, %v714_v36 }
 0x12b   : > { %v717_v39 = vrot.slane %v716_v38, 2 }
 0x12d   : > { %v718_v40 = vadd.f32 %v717_v39, %v716_v38 }
 0x12f   : > { %v719_v41 = vrot.slane %v718_v40, 1 }
 0x131   : > { %v720_v43 = vadd.f32 %v719_v41, %v718_v40 }
 0x133   : > { %v721_v44 = vmul.f32 %v720_v43, %v3269_v42  ;;  %v724_v47 = vmul.f32 %v720_v43, %v3275_v45 }
 0x135   : > { %723 = vst.msk [vmem:[#allocation3] sm:$0x1] %vm722_vm3, %v721_v44 }
 0x147   : > { %1301 = vxpose.xlu0.b32.start [1/2] (short) (narrow) %v669_v1, 64 }
 0x14b   : > { %1302 = vxpose.xlu0.b32.end [2/2] (short) (narrow) %v670_v3, 64  ;;  %v3298_v3 = vld [vmem:[%s573_s27] sm:$0xff] }
 0x14d   : > { %1462 = vxpose.xlu1.b32.start [1/2] (short) (narrow) %v667_v2, 64 }
 0x151   : > { %1463 = vxpose.xlu1.b32.end [2/2] (short) (narrow) %v668_v6, 64  ;;  %v870_v6 = vmul.f32 %v3298_v3, %v665_v49 }
 0x153   : > { %v3318_v22 = vpack.c.bf16 %v871_v10, %v870_v6 }
 0x1a3   : > { %v3277_v46 = vpop.xlane.xlu0 %689 }
 0x1a4   : > { %v725_v48 = vmul.f32 %v721_v44, %v3277_v46 }
 0x1a6   : > { %v726_v51 = vadd.f32 %v725_v48, %v724_v47 }
 0x1a7   : > { %v696_v50 = vpop.xlane.xlu0 %695 }
 0x1a8   : > { %v3283_v52 = vmul.f32 %v696_v50, %v665_v49 }
 0x1aa   : > { %v728_v53 = vadd.f32 %v3283_v52, %v726_v51 }
 0x1ac   : > { %v730_v54 = vrot.slane %v728_v53, 7 }
 0x1ae   : > { %v732_v55 = vmul.f32 %v730_v54, %v3269_v42  ;;  %v735_v56 = vmul.f32 %v730_v54, %v3275_v45 }
 0x1b0   : > { %734 = vst.msk [vmem:[#allocation3] sm:$0x2] %vm733_vm4, %v732_v55  ;;  %v736_v57 = vmul.f32 %v732_v55, %v3277_v46 }
 0x1b2   : > { %v737_v58 = vadd.f32 %v736_v57, %v735_v56  ;;  %v3343_v57 = vpop.xlane.xlu1 %692 }
 0x1b4   : > { %v738_v59 = vadd.f32 %v737_v58, %v3283_v52 }
 0x1b6   : > { %v740_v60 = vrot.slane %v738_v59, 7 }
 0x1b8   : > { %v742_v61 = vmul.f32 %v740_v60, %v3269_v42  ;;  %v745_v62 = vmul.f32 %v740_v60, %v3275_v45 }
 0x1ba   : > { %744 = vst.msk [vmem:[#allocation3] sm:$0x4] %vm743_vm5, %v742_v61  ;;  %v746_v63 = vmul.f32 %v742_v61, %v3277_v46 }
 0x1bc   : > { %v747_v0 = vadd.f32 %v746_v63, %v745_v62  ;;  %v3351_v62 = vld [vmem:[%s546_s13 + $0x8] sm:$0xff]  ;;  %v1993_v63 = vsel %vm1047_vm13, 1.0, %v2700_v28 }
 0x1be   : > { %v748_v1 = vadd.f32 %v747_v0, %v3283_v52 }
 0x1c0   : > { %v750_v2 = vrot.slane %v748_v1, 7  ;;  %v699_v1 = vpop.xlane.xlu1 %698 }
 0x1c1   : > { %v807_v19 = vmul.f32 %v699_v1, %v3308_v8 }
 0x1c2   : > { %v752_v5 = vmul.f32 %v750_v2, %v3269_v42  ;;  %v755_v12 = vmul.f32 %v750_v2, %v3275_v45  ;;  %v674_v2 = vld [vmem:[%s555_s12 + $0x8] sm:$0xff] }
 0x1c4   : > { %754 = vst.msk [vmem:[#allocation3] sm:$0x8] %vm753_vm6, %v752_v5  ;;  %v756_v17 = vmul.f32 %v752_v5, %v3277_v46 }
 0x1c6   : > { %v757_v21 = vadd.f32 %v756_v17, %v755_v12 }
 0x1c7   : > { %v3320_v24 = vpop.trf.xlu0 }
 0x1c8   : > { %v758_v26 = vadd.f32 %v757_v21, %v3283_v52 }
 0x1ca   : > { %v760_v31 = vrot.slane %v758_v26, 7 }
 0x1cb   : > { %v3323_v32 = vpop.trf.xlu0 }
 0x1cc   : > { %v762_v33 = vmul.f32 %v760_v31, %v3269_v42  ;;  %v765_v34 = vmul.f32 %v760_v31, %v3275_v45 }
 0x1ce   : > { %764 = vst.msk [vmem:[#allocation3] sm:$0x10] %vm763_vm8, %v762_v33  ;;  %v766_v35 = vmul.f32 %v762_v33, %v3277_v46 }
 0x1cf   : > { %v1319_v36 = vpop.trf.xlu0 }
 0x1d0   : > { %v767_v37 = vadd.f32 %v766_v35, %v765_v34  ;;  %2123 = vmatprep.mubr.msk.f32.mxu1 %vm1057_vm9, %v1319_v36 }
 0x1d2   : > { %v768_v38 = vadd.f32 %v767_v37, %v3283_v52 }
 0x1d4   : > { %v770_v39 = vrot.slane %v768_v38, 7 }
 0x1d6   : > { %v772_v40 = vmul.f32 %v770_v39, %v3269_v42  ;;  %v775_v41 = vmul.f32 %v770_v39, %v3275_v45 }
 0x1d8   : > { %774 = vst.msk [vmem:[#allocation3] sm:$0x20] %vm773_vm10, %v772_v40  ;;  %v776_v43 = vmul.f32 %v772_v40, %v3277_v46 }
 0x1da   : > { %v777_v44 = vadd.f32 %v776_v43, %v775_v41 }
 0x1dc   : > { %v778_v47 = vadd.f32 %v777_v44, %v3283_v52 }
 0x1de   : > { %v780_v48 = vrot.slane %v778_v47, 7 }
 0x1e0   : > { %v782_v49 = vmul.f32 %v780_v48, %v3269_v42  ;;  %v785_v50 = vmul.f32 %v780_v48, %v3275_v45 }
 0x1e2   : > { %784 = vst.msk [vmem:[#allocation3] sm:$0x40] %vm783_vm11, %v782_v49  ;;  %v786_v51 = vmul.f32 %v782_v49, %v3277_v46 }
 0x1e4   : > { %v787_v53 = vadd.f32 %v786_v51, %v785_v50 }
 0x1e6   : > { %v788_v54 = vadd.f32 %v787_v53, %v3283_v52 }
 0x1e8   : > { %v790_v55 = vrot.slane %v788_v54, 7 }
 0x1ea   : > { %v792_v56 = vmul.f32 %v790_v55, %v3269_v42  ;;  %v795_v58 = vmul.f32 %v790_v55, %v3275_v45 }
 0x1ec   : > { %794 = vst.msk [vmem:[#allocation3] sm:$0x80] %vm793_vm12, %v792_v56  ;;  %v796_v59 = vmul.f32 %v792_v56, %v3277_v46 }
 0x1ee   : > { %v797_v60 = vadd.f32 %v796_v59, %v795_v58 }
 0x1f0   : > { %v798_v61 = vadd.f32 %v797_v60, %v3283_v52 }
 0x1f2   : > { %v800_v0 = vrot.slane %v798_v61, 7  ;;  %v2075_v42 = vpop.f32.mrb[0].mxu0 }
 0x1f3   : > { %v3355_v4 = vmul.f32 %v2075_v42, %v1994_v29  ;;  %v952_v5 = vpop.f32.mrb[1].mxu0  ;;  %v2082_v45 = vpop.f32.mrb[0].mxu1 }
 0x1f4   : > { %v802_v46 = vmul.f32 %v800_v0, %v3351_v62  ;;  %v1053_v6 = vmul.f32 %v1993_v63, %v952_v5  ;;  %v1033_v10 = vpop.f32.mrb[1].mxu1  ;;  %v3358_v12 = vmul.f32 %v2082_v45, %v1994_v29  ;;  %v804_v17 = vmul.f32 %v800_v0, %v674_v2 }
 0x1f5   : > { %v3360_v52 = vmul.f32 %v1993_v63, %v1033_v10  ;;  %v1478_v10 = vpop.trf.xlu1 }
 0x1f6   : > { %803 = vst.msk [vmem:[#allocation3 + $0x8] sm:$0x1] %vm722_vm3, %v802_v46  ;;  %v805_v18 = vmul.f32 %v802_v46, %v3343_v57  ;;  %2087 = vmatprep.mubr.msk.f32.mxu0 %vm1057_vm9, %v1053_v6 }
 0x1f8   : > { %v806_v21 = vadd.f32 %v805_v18, %v804_v17  ;;  %v1320_v18 = vpop.trf.xlu0 }
 0x1fa   : > { %v808_v26 = vadd.f32 %v807_v19, %v806_v21 }
 0x1fc   : > { %v810_v28 = vrot.slane %v808_v26, 7  ;;  %v1479_v26 = vpop.trf.xlu1 }
 0x1fe   : > { %v812_v31 = vmul.f32 %v810_v28, %v3351_v62  ;;  %v814_v29 = vmul.f32 %v810_v28, %v674_v2  ;;  %v1321_v28 = vpop.trf.xlu0 }
 0x200   : > { %813 = vst.msk [vmem:[#allocation3 + $0x8] sm:$0x2] %vm733_vm4, %v812_v31  ;;  %v815_v33 = vmul.f32 %v812_v31, %v3343_v57  ;;  %v868_v31 = vld [vmem:[#allocation3] sm:$0xff] }
 0x202   : > { %v816_v34 = vadd.f32 %v815_v33, %v814_v29  ;;  %v1480_v33 = vpop.trf.xlu1 }
 0x204   : > { %v817_v35 = vadd.f32 %v816_v34, %v807_v19  ;;  %v872_v34 = vmul.f32 %v868_v31, %v3298_v3  ;;  %v2172_v3 = vpack.c.bf16 %v3245_v23, %v3241_v20 }
 0x206   : > { %v819_v36 = vrot.slane %v817_v35, 7  ;;  %v1322_v35 = vpop.trf.xlu0 }
 0x208   : > { %v821_v37 = vmul.f32 %v819_v36, %v3351_v62  ;;  %v823_v8 = vmul.f32 %v819_v36, %v674_v2  ;;  %v2168_v36 = vpack.c.bf16 %v3229_v16, %v3223_v15 }
 0x20a   : > { %822 = vst.msk [vmem:[#allocation3 + $0x8] sm:$0x4] %vm743_vm5, %v821_v37  ;;  %v824_v38 = vmul.f32 %v821_v37, %v3343_v57  ;;  %v1323_v37 = vpop.trf.xlu0 }
 0x20c   : > { %v825_v39 = vadd.f32 %v824_v38, %v823_v8 }
 0x20e   : > { %v826_v40 = vadd.f32 %v825_v39, %v807_v19  ;;  %v1324_v8 = vpop.trf.xlu0 }
 0x210   : > { %v828_v41 = vrot.slane %v826_v40, 7 }
 0x212   : > { %v830_v43 = vmul.f32 %v828_v41, %v3351_v62  ;;  %v832_v44 = vmul.f32 %v828_v41, %v674_v2 }
 0x214   : > { %831 = vst.msk [vmem:[#allocation3 + $0x8] sm:$0x8] %vm753_vm6, %v830_v43  ;;  %v833_v47 = vmul.f32 %v830_v43, %v3343_v57 }
 0x216   : > { %v834_v48 = vadd.f32 %v833_v47, %v832_v44 }
 0x218   : > { %v835_v49 = vadd.f32 %v834_v48, %v807_v19 }
 0x21a   : > { %v837_v50 = vrot.slane %v835_v49, 7 }
 0x21c   : > { %v839_v51 = vmul.f32 %v837_v50, %v3351_v62  ;;  %v841_v53 = vmul.f32 %v837_v50, %v674_v2 }
 0x21e   : > { %840 = vst.msk [vmem:[#allocation3 + $0x8] sm:$0x10] %vm763_vm8, %v839_v51  ;;  %v842_v54 = vmul.f32 %v839_v51, %v3343_v57 }
 0x220   : > { %v843_v55 = vadd.f32 %v842_v54, %v841_v53 }
 0x222   : > { %v844_v56 = vadd.f32 %v843_v55, %v807_v19 }
 0x224   : > { %v846_v58 = vrot.slane %v844_v56, 7 }
 0x226   : > { %v848_v59 = vmul.f32 %v846_v58, %v3351_v62  ;;  %v850_v60 = vmul.f32 %v846_v58, %v674_v2 }
 0x228   : > { %849 = vst.msk [vmem:[#allocation3 + $0x8] sm:$0x20] %vm773_vm10, %v848_v59  ;;  %v851_v61 = vmul.f32 %v848_v59, %v3343_v57 }
 0x22a   : > { %v852_v63 = vadd.f32 %v851_v61, %v850_v60 }
 0x22c   : > { %v853_v0 = vadd.f32 %v852_v63, %v807_v19 }
 0x22e   : > { %v855_v1 = vrot.slane %v853_v0, 7 }
 0x230   : > { %v857_v42 = vmul.f32 %v855_v1, %v3351_v62  ;;  %v859_v5 = vmul.f32 %v855_v1, %v674_v2 }
 0x232   : > { %858 = vst.msk [vmem:[#allocation3 + $0x8] sm:$0x40] %vm783_vm11, %v857_v42  ;;  %v860_v45 = vmul.f32 %v857_v42, %v3343_v57 }
 0x234   : > { %v861_v46 = vadd.f32 %v860_v45, %v859_v5 }
 0x236   : > { %v862_v6 = vadd.f32 %v861_v46, %v807_v19  ;;  %v2164_v19 = vpack.c.bf16 %v3221_v14, %v3219_v13 }
 0x238   : > { %v864_v17 = vrot.slane %v862_v6, 7 }
 0x23a   : > { %v866_v21 = vmul.f32 %v864_v17, %v3351_v62  ;;  %v1481_v62 = vpop.trf.xlu1 }
 0x23c   : > { %867 = vst.msk [vmem:[#allocation3 + $0x8] sm:$0x80] %vm793_vm12, %v866_v21 }
 0x243   : > { %v869_v29 = vld [vmem:[#allocation3 + $0x8] sm:$0xff] }
 0x244   : > { %v873_v2 = vmul.f32 %v869_v29, %v3304_v7  ;;  %v1482_v7 = vpop.trf.xlu1 }
 0x246   : > { %v2160_v57 = vpack.c.bf16 %v873_v2, %v872_v34 }
 0x248   : > { %2161 = vmatprep.subr.bf16.mxu0 %v2160_v57  ;;  %2192 = vmatprep.subr.bf16.mxu1 %v2160_v57  ;;  %v1483_v38 = vpop.trf.xlu1 }
 0x249   : > { %2163 = vmatpush3.bf16.msra.mxu0 %v2160_v57  ;;  %2193 = vmatpush3.bf16.msra.mxu1 %v2160_v57 }
 0x24a   : > { %2165 = vmatprep.subr.bf16.mxu0 %v2164_v19  ;;  %2189 = vmatprep.subr.bf16.mxu1 %v3318_v22 }
 0x24c   : > { %2088 = vmatmul.mubr.msk.f32.vlgmr.msra.gmra.mrb[2].mxu0 %vm1057_vm9, %v3355_v4  ;;  %2124 = vmatmul.mubr.msk.f32.vlgmr.msra.gmra.mrb[2].mxu1 %vm1057_vm9, %v1320_v18  ;;  %v2176_v4 = vpack.c.bf16 %v3259_v30, %v3253_v27 }
 0x24d   : > { %2167 = vmatpush3.bf16.msra.mxu0 %v2164_v19  ;;  %2126 = vmatprep.mubr.msk.f32.mxu1 %vm1057_vm9, %v1321_v28 }
 0x24e   : > { %2169 = vmatprep.subr.bf16.mxu0 %v2168_v36  ;;  %2191 = vmatpush3.bf16.msra.mxu1 %v3318_v22 }
 0x24f   : > { %2106 = vmatprep.mubr.msk.f32.mxu0 %vm687_vm1, %v3211_v9  ;;  %v1484_v9 = vpop.trf.xlu1 }
 0x250   : > { %2127 = vmatmul.mubr.msk.f32.gmra.mrb[4].mxu1 %vm1057_vm9, %v1322_v35 }
 0x251   : > { %2171 = vmatpush3.bf16.msra.mxu0 %v2168_v36  ;;  %2129 = vmatprep.mubr.msk.f32.mxu1 %vm1057_vm9, %v1323_v37 }
 0x252   : > { %2173 = vmatprep.subr.bf16.mxu0 %v2172_v3 }
 0x253   : > { %v1485_v39 = vpop.trf.xlu1 }
 0x254   : > { %2130 = vmatmul.mubr.msk.f32.gmra.mrb[6].mxu1 %vm1057_vm9, %v1324_v8 }
 0x255   : > { %2175 = vmatpush3.bf16.msra.mxu0 %v2172_v3  ;;  %2136 = vmatprep.mubr.msk.f32.mxu1 %vm1057_vm9, %v1478_v10 }
 0x256   : > { %2177 = vmatprep.subr.bf16.mxu0 %v2176_v4 }
 0x258   : > { %2137 = vmatmul.mubr.msk.f32.vlgmr.msra.gmra.mrb[8].mxu1 %vm1057_vm9, %v1479_v26 }
 0x259   : > { %2179 = vmatpush3.bf16.msra.mxu0 %v2176_v4  ;;  %2139 = vmatprep.mubr.msk.f32.mxu1 %vm1057_vm9, %v1480_v33 }
 0x25a   : > { %2181 = vmatprep.subr.bf16.mxu0 %v3318_v22 }
 0x25c   : > { %2107 = vmatmul.mubr.msk.f32.vlgmr.msra.gmra.mrb[2].mxu0 %vm687_vm1, %v3249_v25  ;;  %2140 = vmatmul.mubr.msk.f32.gmra.mrb[2].mxu1 %vm1057_vm9, %v1481_v62  ;;  %v1641_v25 = vsub.s32 7, %v3312_v11 }
 0x25d   : > { %2183 = vmatpush3.bf16.msra.mxu0 %v3318_v22  ;;  %2142 = vmatprep.mubr.msk.f32.mxu1 %vm1057_vm9, %v1482_v7 }
 0x25e   : > { %2185 = vmatprep.subr.bf16.mxu0 %v2160_v57  ;;  %2113 = vmatprep.mubr.msk.f32.mxu0 %vm1057_vm9, %v3360_v52  ;;  %v676_v52 = vld [vmem:[%s564_s11 + $0x8] sm:$0xff] }
 0x25f   : > { %v3434_v41 = vrot.slane %v676_v52, %v1641_v25 }
 0x260   : > { %2143 = vmatmul.mubr.msk.f32.gmra.mrb[4].mxu1 %vm1057_vm9, %v1483_v38 }
 0x261   : > { %2145 = vmatprep.mubr.msk.f32.mxu1 %vm1057_vm9, %v1484_v9 }
 0x264   : > { %2114 = vmatmul.mubr.msk.f32.vlgmr.msra.gmra.mrb[2].mxu0 %vm1057_vm9, %v3358_v12  ;;  %2146 = vmatmul.mubr.msk.f32.gmra.mrb[6].mxu1 %vm1057_vm9, %v1485_v39 }
 0x265   : > { %2187 = vmatpush3.bf16.msra.mxu0 %v2160_v57  ;;  %2120 = vmatprep.mubr.msk.f32.mxu0 %vm1057_vm9, %v3320_v24 }
 0x268   : > { %2121 = vmatmul.mubr.msk.f32.vlgmr.msra.gmra.mrb[4].mxu0 %vm1057_vm9, %v3323_v32 }
 0x32b   : > { %v3428_v22 = vpop.f32.mrb[8].mxu1 }
 0x32c   : > { %v3432_v40 = vpop.f32.mrb[9].mxu1 }
 0x32f   : > { %v2141_v12 = vpop.f32.mrb[2].mxu1 }
 0x330   : > { %v2198_v24 = vadd.f32 %v2141_v12, %v3229_v16  ;;  %v1594_v43 = vpop.f32.mrb[3].mxu1  ;;  %v675_v16 = vld [vmem:[%s564_s11] sm:$0xff] }
 0x331   : > { %v2199_v32 = vadd.f32 %v1594_v43, %v3223_v15 }
 0x332   : > { %v1646_v11 = vmul.f32 %v2198_v24, %v3434_v41 }
 0x333   : > { %v2144_v44 = vpop.f32.mrb[4].mxu1  ;;  %v1645_v47 = vmul.f32 %v2199_v32, %v3434_v41 }
 0x334   : > { %v2200_v48 = vadd.f32 %v2144_v44, %v3245_v23  ;;  %v1604_v49 = vpop.f32.mrb[5].mxu1  ;;  %1654 = vst.msk [vmem:[#allocation2 + $0x18] sm:$0xff] %vm687_vm1, %v1646_v11 }
 0x335   : > { %v2201_v50 = vadd.f32 %v1604_v49, %v3241_v20  ;;  %1653 = vst.msk [vmem:[#allocation2 + $0x10] sm:$0xff] %vm687_vm1, %v1645_v47 }
 0x336   : > { %v1648_v15 = vmul.f32 %v2200_v48, %v3434_v41 }
 0x337   : > { %v2115_v51 = vpop.f32.mrb[2].mxu0  ;;  %v1647_v53 = vmul.f32 %v2201_v50, %v3434_v41  ;;  %v2147_v54 = vpop.f32.mrb[6].mxu1 }
 0x338   : > { %v1298_v23 = vmul.f32 %v2115_v51, %v676_v52  ;;  %1656 = vst.msk [vmem:[#allocation2 + $0x28] sm:$0xff] %vm687_vm1, %v1648_v15  ;;  %v2202_v55 = vadd.f32 %v2147_v54, %v3259_v30  ;;  %v1286_v20 = vpop.f32.mrb[3].mxu0  ;;  %v1614_v56 = vpop.f32.mrb[7].mxu1 }
 0x339   : > { %1655 = vst.msk [vmem:[#allocation2 + $0x20] sm:$0xff] %vm687_vm1, %v1647_v53  ;;  %v1297_v58 = vmul.f32 %v1286_v20, %v675_v16  ;;  %v2203_v59 = vadd.f32 %v1614_v56, %v3253_v27 }
 0x33a   : > { %1300 = vst.msk [vmem:[%s3190_s15 + $0x8] sm:$0xff] %vm687_vm1, %v1298_v23  ;;  %v1650_v30 = vmul.f32 %v2202_v55, %v3434_v41 }
 0x33b   : > { %1299 = vst.msk [vmem:[%s3190_s15] sm:$0xff] %vm687_vm1, %v1297_v58  ;;  %v1649_v60 = vmul.f32 %v2203_v59, %v3434_v41  ;;  %v2122_v61 = vpop.f32.mrb[4].mxu0 }
 0x33c   : > { %1658 = vst.msk [vmem:[#allocation2 + $0x38] sm:$0xff] %vm687_vm1, %v1650_v30  ;;  %v1624_v63 = vadd.f32 %v2122_v61, %v3221_v14  ;;  %v1423_v0 = vpop.f32.mrb[5].mxu0 }
 0x33d   : > { %2586 = shalt.err (!%p2583_p9)
}
 0x33e   : > { %s2587_s17 = scalar_lea.hbm %s3456_s24, 256  ;;  %s2591_s12 = scalar_lea.hbm %s3538_s8, 2048 }
 0x33f   : > { %p2588_p5 = scmp.ne.s32.totalorder %s3456_s24, %s2587_s17  ;;  %p2592_p3 = scmp.lt.u32.totalorder %s3456_s24, %s3538_s8 }
 0x340   : > { %p2593_p13 = scmp.lt.u32.totalorder %s2591_s12, %s2587_s17  ;;  %p2595_p10 = scmp.lt.u32.totalorder %s2587_s17, %s3456_s24 }
 0x341   : > { %p2589_p12 = pnand %p2588_p5, %p3591_p6 }
 0x342   : > { %p2594_p0 = por %p2593_p13, %p2592_p3 }
 0x343   : > { %p2590_p11 = pneg %p2589_p12 }
 0x344   : > { %p2596_p2 = por %p2595_p10, %p2594_p0 }
 0x346   : > { %p2597_p4 = pnand %p2596_p2, %p2590_p11 }
 0x348   : > { %2600 = shalt.err (!%p2597_p4)
}
 0x349   : > { %s2702_s27 = smov 128   ;;  %s2703_s15 = smov 8   ;;  %1657 = vst.msk [vmem:[#allocation2 + $0x30] sm:$0xff] %vm687_vm1, %v1649_v60  ;;  %v1623_v14 = vadd.f32 %v1423_v0, %v3219_v13  ;;  %v1632_v27 = vadd.f32 %v3428_v22, %v1624_v63 }
 0x34a   : > { %2230 = dma.vmem_to_hbm [thread:$0]  (%p3591_p6), %s3458_s9, 256, %s3456_s24, %s1660_s25, %s2702_s27, %s2702_s27, %s2703_s15  }
 0x34b   : > { %v1631_v1 = vadd.f32 %v1623_v14, %v3432_v40  ;;  %v1644_v42 = vmul.f32 %v3434_v41, %v1632_v27 }
 0x34d   : > { %v1643_v5 = vmul.f32 %v3434_v41, %v1631_v1  ;;  %1652 = vst.msk [vmem:[#allocation2 + $0x8] sm:$0xff] %vm687_vm1, %v1644_v42 }
 0x34f   : > { %1651 = vst.msk [vmem:[#allocation2] sm:$0xff] %vm687_vm1, %v1643_v5 }
 0x350 PF: > { %s3592_s20 = sld [smem:[#allocation29_spill]]  ;;  %s3593_s18 = sld [smem:[#allocation25_spill]] }
 0x351   : > { %s3594_s19 = sld [smem:[#allocation33_spill]] }
 0x356   : > { %p2262_p6 = scmp.ge.s32.totalorder %s3592_s20, 2  ;;  %s1690_s3 = sand.u32 1, %s3593_s18  }
 0x357   : > { %p3595_p7 = scmp.ne.s32.totalorder %s3594_s19, 0  ;;  %s1691_s30 = scalar_lea.sflag [#allocation6], %s1690_s3 }
 0x359   : > { %p2258_p1 = pnand %p2262_p6, %p3595_p7 }
 0x35b   : > { %2654 = dma.done.wait (!%p2258_p1), %s1691_s30, 256  }
 0x35c   : > { %2656 = vsyncadd (!%p2258_p1), %s1691_s30, 4294967040  ;;  %s36_s12 = sadd.s32 1, %s3592_s20   ;;  %s3596_s9 = sld [smem:[#allocation26_spill]] }
 0x35d   : > { %p33_p8 = scmp.ge.s32.totalorder %s36_s12, 10   ;;  %s3597_s29 = sld [smem:[#allocation34_spill]] }
 0x35e   : > { %s3598_s30 = sld [smem:[#allocation27_spill]]  ;;  %s3599_s10 = sld [smem:[#allocation28_spill]] }
 0x35f   : > { %s3600_s14 = sld [smem:[#allocation30_spill]]  ;;  %s3601_s11 = sld [smem:[#allocation31_spill]] }
 0x360   : > { %s3602_s27 = smov %s2663_s28  ;;  %35 = sbr.rel (!%p33_p8) target bundleno = 18 (0x12), region = 186 }
 0x362   : > { %s3603_s28 = smov %s3596_s9 }
 0x364   : > { %s3604_s9 = smov %s3599_s10 }
 0x365   : > { %s3605_s10 = smov %s3600_s14 }
 0x367   :  { %1696 = vsyncpa [#allocation5], 1 }
 0x368   :  { %1698 = vsyncpa [#allocation5 + $0x1], 1 }
 0x369   :  { %1699 = vsyncpa [#allocation8], 1 }
 0x36a   :  { %1701 = vsyncpa [#allocation8 + $0x1], 1 }
 0x36b   :  { %1702 = vsyncpa [#allocation11], 1 }
 0x36c   :  { %1704 = vsyncpa [#allocation11 + $0x1], 1 }
 0x36d   :  { %1705 = vsyncpa [#allocation14], 1 }
 0x36e   :  { %1707 = vsyncpa [#allocation14 + $0x1], 1 }
 0x36f   :  { %1708 = vsyncpa [#allocation17], 1 }
 0x370   :  { %1710 = vsyncpa [#allocation17 + $0x1], 1 }
 0x371   :  { %1711 = vsyncpa [#allocation6], 1 }
 0x372   :  { %1713 = vsyncpa [#allocation6 + $0x1], 1 }

</bundles_post_ra>
